<compile_context>
chip_gen: v7x
topology: tpu7x:2x2x1
jax: 0.10.0
libtpu: 0.0.40
codegen_flags: <defaults>
</compile_context>

<pallas_src>
import functools

import jax
import jax.numpy as jnp
import numpy as np
from jax.experimental import pallas as pl
from jax.experimental.pallas import tpu as pltpu


# ----------------------------------------------------------------------------
# Kernel
# ----------------------------------------------------------------------------
def _skip_plus_kernel(*refs, W, Th, KH, KW, PADL, have_skip):
    """One (batch, row-tile) grid step.

    have_skip refs: scal(SMEM f32[1]), x(1,Cin,Th*W), halo(1,1,Cin,2*ph*W),
                    w(KH*KW,Cout,Cin), b(Cout,1), skip(1,1,Cout,Th2*W2),
                    rw(W2,W), out(1,Cout,Th*W), xh scratch (Cin, Lp)
    no-skip  refs: x, halo, w, b, out, xh scratch
    """
    if have_skip:
        (scal_ref, x_ref, halo_ref, w_ref, b_ref, s_ref, rw_ref,
         o_ref, xh_ref) = refs
    else:
        x_ref, halo_ref, w_ref, b_ref, o_ref, xh_ref = refs

    Cout = o_ref.shape[1]
    ThW = Th * W
    ph, pw = (KH - 1) // 2, (KW - 1) // 2
    halo_w = ph * W                       # flat width of one (top/bottom) halo

    # ---- assemble the halo'd flat input slab in VMEM -----------------------
    #   [PADL-halo_w, PADL)          : ph rows above the tile (zeros at image top)
    #   [PADL, PADL+ThW)             : the tile itself (aligned store)
    #   [PADL+ThW, PADL+ThW+halo_w)  : ph rows below the tile (zeros at bottom)
    halo = halo_ref[0, 0]                                    # (Cin, 2*halo_w)
    xh_ref[:, PADL - halo_w:PADL] = halo[:, :halo_w]
    xh_ref[:, PADL:PADL + ThW] = x_ref[0]
    xh_ref[:, PADL + ThW:PADL + ThW + halo_w] = halo[:, halo_w:]

    # ---- horizontal wrap masks, hoisted out of the tap loop ----------------
    wpos = jax.lax.broadcasted_iota(jnp.int32, (1, ThW), 1) % W
    masks = {}
    for kw in range(KW):
        dw = kw - pw
        if dw < 0:
            masks[kw] = wpos >= -dw
        elif dw > 0:
            masks[kw] = wpos < (W - dw)

    # ---- conv as KH*KW direct MXU matmuls, f32 accumulation, bias folded ---
    acc = jnp.broadcast_to(b_ref[...], (Cout, ThW)).astype(jnp.float32)
    base = PADL - ph * W - pw
    for kh in range(KH):
        for kw in range(KW):
            q0 = base + kh * W + kw
            sl = xh_ref[:, q0:q0 + ThW]                      # (Cin, ThW)
            if kw in masks:                                  # zero wrapped taps
                sl = jnp.where(masks[kw], sl, 0)
            acc = acc + jnp.dot(w_ref[kh * KW + kw], sl,
                                preferred_element_type=jnp.float32)

    # ---- factorized 2x nearest upsample of the skip -------------------------
    if have_skip:
        W2, Th2 = W // 2, Th // 2
        s = s_ref[0, 0]                                      # (Cout, Th2*W2)
        rw = rw_ref[...]                                     # (W2, W) 0/1
        pieces = []
        for j in range(Th2):
            wide = jnp.dot(s[:, j * W2:(j + 1) * W2], rw,
                           preferred_element_type=jnp.float32)   # (Cout, W)
            pieces.append(wide)                              # output row 2j
            pieces.append(wide)                              # output row 2j+1
        up = jnp.concatenate(pieces, axis=1)                 # (Cout, ThW)
        acc = acc + scal_ref[0] * up

    o_ref[0] = acc.astype(o_ref.dtype)


# ----------------------------------------------------------------------------
# Host-side helpers
# ----------------------------------------------------------------------------
def _round_up(a, m):
    return (a + m - 1) // m * m


def _width_doubling_operator(W2, dtype):
    """0/1 matrix (W2, 2*W2): nearest 2x width upsample as a matmul."""
    w = np.arange(2 * W2)
    op = (np.arange(W2)[:, None] == (w[None, :] // 2)).astype(np.float32)
    return jnp.asarray(op, dtype)


def _vmem_estimate(Th, W, Cin, Cout, KH, KW, have_skip, act_bytes, out_bytes):
    ThW = Th * W
    ph, pw = (KH - 1) // 2, (KW - 1) // 2
    padl = _round_up(ph * W + pw, 128)
    lp = padl + ThW + padl
    est = 2 * Cin * ThW * act_bytes                 # x blocks (double buffered)
    est += 2 * Cout * ThW * out_bytes               # out blocks
    est += 2 * Cin * 2 * ph * W * act_bytes         # halo rows
    est += 2 * KH * KW * Cout * Cin * act_bytes     # conv weights
    est += 2 * Cout * 4                             # bias
    if have_skip:
        est += 2 * Cout * (ThW // 4) * act_bytes    # skip tile
        est += 2 * (W // 2) * W * act_bytes         # width operator
    est += Cin * lp * act_bytes                     # halo'd slab scratch
    est += Cout * ThW * 4                           # f32 accumulator
    return est


def _choose_tile_rows(H, W, B, Cin, Cout, KH, KW, have_skip,
                      act_bytes, out_bytes, budget_bytes=20 * 2 ** 20):
    cands = [t for t in range(2, H + 1)
             if H % t == 0 and t % 2 == 0 and ((t * W) % 128 == 0 or t == H)]
    if not cands:
        cands = [H]

    def est(t):
        return _vmem_estimate(t, W, Cin, Cout, KH, KW, have_skip,
                              act_bytes, out_bytes)

    fitting = [t for t in cands if est(t) <= budget_bytes] or [min(cands)]
    # Prefer >= 8 grid steps (pipeline/megacore) with a lane dim >= 512.
    pref = [t for t in fitting if B * (H // t) >= 8 and t * W >= 512 and t <= 64]
    if pref:
        return max(pref)
    # Otherwise maximize the number of grid steps.
    return min(fitting)


# ----------------------------------------------------------------------------
# Forward wrapper
# ----------------------------------------------------------------------------
def skip_plus_forward(x_nchw, skip_nchw, conv_w_oihw, conv_b, w_param,
                      bias_param, compute_dtype=None):
    """SkipPlus forward (PyTorch NCHW convention for all tensors)."""
    B, Cin, H, W = x_nchw.shape
    Cout, Cin2, KH, KW = conv_w_oihw.shape
    assert Cin2 == Cin and KH % 2 == 1 and KW % 2 == 1
    out_dtype = x_nchw.dtype
    cdt = out_dtype if compute_dtype is None else compute_dtype
    act_bytes = jnp.dtype(cdt).itemsize
    out_bytes = jnp.dtype(out_dtype).itemsize

    have_skip = skip_nchw is not None
    if have_skip:
        assert H % 2 == 0 and W % 2 == 0
        assert skip_nchw.shape == (B, Cout, H // 2, W // 2)

    HW = H * W
    ph, pw = (KH - 1) // 2, (KW - 1) // 2

    Th = _choose_tile_rows(H, W, B, Cin, Cout, KH, KW, have_skip,
                           act_bytes, out_bytes)
    nR = H // Th
    ThW = Th * W
    PADL = _round_up(ph * W + pw, 128)
    Lp = PADL + ThW + PADL

    # ---- operands -----------------------------------------------------------
    x = x_nchw.reshape(B, Cin, HW).astype(cdt)

    # ph halo rows above and below every row tile, zero-padded at the image
    # border, gathered once host-side (tiny: 2*ph/Th of x).
    xp = jnp.pad(x_nchw, ((0, 0), (0, 0), (ph, ph), (0, 0)))
    rows = np.array([list(range(r * Th, r * Th + ph)) +
                     list(range(r * Th + Th + ph, r * Th + Th + 2 * ph))
                     for r in range(nR)])                     # (nR, 2*ph)
    halo = xp[:, :, rows, :]                                  # (B,Cin,nR,2ph,W)
    halo = halo.transpose(0, 2, 1, 3, 4).reshape(B, nR, Cin, 2 * ph * W)
    halo = halo.astype(cdt)

    # per-tap conv weights (KH*KW, Cout, Cin), tap index k = kh*KW + kw
    w_taps = jnp.transpose(conv_w_oihw, (2, 3, 0, 1)).reshape(
        KH * KW, Cout, Cin).astype(cdt)

    if have_skip:
        # fold conv bias + SkipPlus bias into one f32 vector
        b_vec = (conv_b.astype(jnp.float32)
                 + bias_param.reshape(()).astype(jnp.float32)).reshape(Cout, 1)
        W2, Th2 = W // 2, Th // 2
        skip_t = skip_nchw.reshape(B, Cout, nR, Th2, W2)
        skip_t = skip_t.transpose(0, 2, 1, 3, 4).reshape(B, nR, Cout, Th2 * W2)
        skip_t = skip_t.astype(cdt)
        rw_op = _width_doubling_operator(W2, cdt)             # (W2, W)
        scal = w_param.reshape((1,)).astype(jnp.float32)
        skip_spec = pl.BlockSpec((1, 1, Cout, Th2 * W2),
                                 lambda b, r: (b, r, 0, 0))
    else:
        b_vec = conv_b.astype(jnp.float32).reshape(Cout, 1)

    kernel = functools.partial(_skip_plus_kernel, W=W, Th=Th, KH=KH, KW=KW,
                               PADL=PADL, have_skip=have_skip)

    x_spec = pl.BlockSpec((1, Cin, ThW), lambda b, r: (b, 0, r))
    halo_spec = pl.BlockSpec((1, 1, Cin, 2 * ph * W), lambda b, r: (b, r, 0, 0))
    out_spec = pl.BlockSpec((1, Cout, ThW), lambda b, r: (b, 0, r))

    est = _vmem_estimate(Th, W, Cin, Cout, KH, KW, have_skip,
                         act_bytes, out_bytes)
    vmem_limit = int(min(max(2 * est, 32 * 2 ** 20), 56 * 2 ** 20))

    def run(single_buffer_constants):
        # grid-invariant operands: single-buffered when supported
        ckw = ({"pipeline_mode": pl.Buffered(1)}
               if single_buffer_constants else {})
        w_spec = pl.BlockSpec((KH * KW, Cout, Cin), lambda b, r: (0, 0, 0), **ckw)
        b_spec = pl.BlockSpec((Cout, 1), lambda b, r: (0, 0), **ckw)
        if have_skip:
            rw_spec = pl.BlockSpec((W2, W), lambda b, r: (0, 0), **ckw)
            in_specs = [pl.BlockSpec(memory_space=pltpu.MemorySpace.SMEM),
                        x_spec, halo_spec, w_spec, b_spec, skip_spec, rw_spec]
            args = (scal, x, halo, w_taps, b_vec, skip_t, rw_op)
        else:
            in_specs = [x_spec, halo_spec, w_spec, b_spec]
            args = (x, halo, w_taps, b_vec)
        return pl.pallas_call(
            kernel,
            out_shape=jax.ShapeDtypeStruct((B, Cout, HW), out_dtype),
            grid=(B, nR),
            in_specs=in_specs,
            out_specs=out_spec,
            scratch_shapes=[pltpu.VMEM((Cin, Lp), cdt)],
            compiler_params=pltpu.CompilerParams(
                dimension_semantics=("parallel", "parallel"),
                vmem_limit_bytes=vmem_limit),
        )(*args)

    try:
        out = run(True)
    except Exception:   # pl.Buffered(1) not supported on this jax/libtpu combo
        out = run(False)

    return out.reshape(B, Cout, H, W)


# ----------------------------------------------------------------------------
# Plain-JAX reference (mirrors the PyTorch forward)
# ----------------------------------------------------------------------------
def reference_forward(x_nchw, skip_nchw, conv_w_oihw, conv_b, w_param,
                      bias_param):
    out = jax.lax.conv_general_dilated(
        x_nchw, conv_w_oihw, window_strides=(1, 1), padding="SAME",
        dimension_numbers=("NCHW", "OIHW", "NCHW"))
    out = out + conv_b[None, :, None, None]
    if skip_nchw is not None:
        skip_up = jnp.repeat(jnp.repeat(skip_nchw, 2, axis=2), 2, axis=3)
        out = out + w_param.reshape(()) * skip_up + bias_param.reshape(())
    return out


if __name__ == "__main__":
    key = jax.random.PRNGKey(0)
    k_x, k_s, k_w, k_b, k_p, k_x2, k_s2, k_w2, k_b2 = jax.random.split(key, 9)

    # ---- small case from the module spec: B=2, C=4, H=W=16 ------------------
    B, C, H, W = 2, 4, 16, 16
    x = jax.random.normal(k_x, (B, C, H, W), jnp.float32)
    skip = jax.random.normal(k_s, (B, C, H // 2, W // 2), jnp.float32)
    conv_w = 0.1 * jax.random.normal(k_w, (C, C, 3, 3), jnp.float32)   # OIHW
    conv_b = 0.1 * jax.random.normal(k_b, (C,), jnp.float32)
    wb = jax.random.normal(k_p, (2,), jnp.float32)
    w_param, bias_param = wb[:1], wb[1:]

    out = jax.block_until_ready(
        skip_plus_forward(x, skip, conv_w, conv_b, w_param, bias_param))
    ref = reference_forward(x, skip, conv_w, conv_b, w_param, bias_param)
    np.testing.assert_allclose(np.asarray(out), np.asarray(ref),
                               rtol=1e-4, atol=1e-4)

    # skip=None path (dedicated variant)
    out0 = jax.block_until_ready(
        skip_plus_forward(x, None, conv_w, conv_b, w_param, bias_param))
    ref0 = reference_forward(x, None, conv_w, conv_b, w_param, bias_param)
    np.testing.assert_allclose(np.asarray(out0), np.asarray(ref0),
                               rtol=1e-4, atol=1e-4)

    # ---- wider case: exercises multi row-tile + halo + lane-dense W ---------
    B2, C2, Hb, Wb = 1, 8, 32, 128
    x2 = jax.random.normal(k_x2, (B2, C2, Hb, Wb), jnp.float32)
    skip2 = jax.random.normal(k_s2, (B2, C2, Hb // 2, Wb // 2), jnp.float32)
    conv_w2 = 0.1 * jax.random.normal(k_w2, (C2, C2, 3, 3), jnp.float32)
    conv_b2 = 0.1 * jax.random.normal(k_b2, (C2,), jnp.float32)

    out2 = jax.block_until_ready(
        skip_plus_forward(x2, skip2, conv_w2, conv_b2, w_param, bias_param))
    ref2 = reference_forward(x2, skip2, conv_w2, conv_b2, w_param, bias_param)
    np.testing.assert_allclose(np.asarray(out2), np.asarray(ref2),
                               rtol=1e-4, atol=1e-4)

    # bf16 HBM activations (f32 accumulation) — production dtype path
    out2b = jax.block_until_ready(
        skip_plus_forward(x2, skip2, conv_w2, conv_b2, w_param, bias_param,
                          compute_dtype=jnp.bfloat16))
    np.testing.assert_allclose(np.asarray(out2b), np.asarray(ref2),
                               rtol=5e-2, atol=5e-2)

    print("KERNEL_OK")
</pallas_src>

<mosaic_0001>
module attributes {stable_mosaic.version = 11 : i64} {
  func.func @_skip_plus_kernel(%arg0: i32, %arg1: i32, %arg2: memref<1xf32, #tpu.memory_space<smem>>, %arg3: memref<1x4x128xf32, #tpu.memory_space<vmem>>, %arg4: memref<1x1x4x32xf32, #tpu.memory_space<vmem>>, %arg5: memref<9x4x4xf32, #tpu.memory_space<vmem>>, %arg6: memref<4x1xf32, #tpu.memory_space<vmem>>, %arg7: memref<1x1x4x32xf32, #tpu.memory_space<vmem>>, %arg8: memref<8x16xf32, #tpu.memory_space<vmem>>, %arg9: memref<1x4x128xf32, #tpu.memory_space<vmem>>, %arg10: memref<4x384xf32, #tpu.memory_space<vmem>>) attributes {dimension_semantics = [#tpu.dimension_semantics<parallel>, #tpu.dimension_semantics<parallel>], iteration_bounds = array<i64: 2, 2>, scalar_prefetch = 0 : i64, scratch_operands = 1 : i64, tpu.core_type = #tpu.core_type<tc>, window_params = [{transform_indices = @transform_0, window_bounds = array<i64: 1>}, {transform_indices = @transform_1, window_bounds = array<i64: 1, 4, 128>}, {transform_indices = @transform_2, window_bounds = array<i64: 1, 1, 4, 32>}, {pipeline_mode = #tpu.pipeline_mode<synchronous>, transform_indices = @transform_3, window_bounds = array<i64: 9, 4, 4>}, {pipeline_mode = #tpu.pipeline_mode<synchronous>, transform_indices = @transform_4, window_bounds = array<i64: 4, 1>}, {transform_indices = @transform_5, window_bounds = array<i64: 1, 1, 4, 32>}, {pipeline_mode = #tpu.pipeline_mode<synchronous>, transform_indices = @transform_6, window_bounds = array<i64: 8, 16>}, {transform_indices = @transform_7, window_bounds = array<i64: 1, 4, 128>}]} {
    %c0 = arith.constant 0 : index
    %c0_0 = arith.constant 0 : index
    %c0_1 = arith.constant 0 : index
    %c0_2 = arith.constant 0 : index
    %0 = vector.load %arg4[%c0, %c0_0, %c0_1, %c0_2] : memref<1x1x4x32xf32, #tpu.memory_space<vmem>>, vector<1x1x4x32xf32>
    %1 = vector.shape_cast %0 : vector<1x1x4x32xf32> to vector<4x32xf32>
    %2 = vector.extract_strided_slice %1 {offsets = [0, 0], sizes = [4, 16], strides = [1, 1]} : vector<4x32xf32> to vector<4x16xf32>
    %c0_3 = arith.constant 0 : index
    %c112 = arith.constant 112 : index
    %3 = vector.load %arg10[%c0_3, %c112] : memref<4x384xf32, #tpu.memory_space<vmem>>, vector<4x16xf32>
    tpu.vector_store %arg10[%c0_3, %c112], %2 {strides = array<i32>} : memref<4x384xf32, #tpu.memory_space<vmem>>, vector<4x16xf32>,
    %c0_4 = arith.constant 0 : index
    %c0_5 = arith.constant 0 : index
    %c0_6 = arith.constant 0 : index
    %4 = vector.load %arg3[%c0_4, %c0_5, %c0_6] : memref<1x4x128xf32, #tpu.memory_space<vmem>>, vector<1x4x128xf32>
    %5 = vector.shape_cast %4 : vector<1x4x128xf32> to vector<4x128xf32>
    %c0_7 = arith.constant 0 : index
    %c128 = arith.constant 128 : index
    %6 = vector.load %arg10[%c0_7, %c128] : memref<4x384xf32, #tpu.memory_space<vmem>>, vector<4x128xf32>
    tpu.vector_store %arg10[%c0_7, %c128], %5 {strides = array<i32>} : memref<4x384xf32, #tpu.memory_space<vmem>>, vector<4x128xf32>,
    %7 = vector.extract_strided_slice %1 {offsets = [0, 16], sizes = [4, 16], strides = [1, 1]} : vector<4x32xf32> to vector<4x16xf32>
    %c0_8 = arith.constant 0 : index
    %c256 = arith.constant 256 : index
    %8 = vector.load %arg10[%c0_8, %c256] : memref<4x384xf32, #tpu.memory_space<vmem>>, vector<4x16xf32>
    tpu.vector_store %arg10[%c0_8, %c256], %7 {strides = array<i32>} : memref<4x384xf32, #tpu.memory_space<vmem>>, vector<4x16xf32>,
    %9 = tpu.iota {dimensions = array<i32: 1>} : vector<1x128xi32>
    %c16_i32 = arith.constant 16 : i32
    %c0_i32 = arith.constant 0 : i32
    %10 = arith.cmpi eq, %c16_i32, %c0_i32 : i32
    %c1_i32 = arith.constant 1 : i32
    %11 = arith.select %10, %c1_i32, %c16_i32 : i32
    %12 = vector.broadcast %11 : i32 to vector<1x128xi32>
    %13 = arith.remsi %9, %12 : vector<1x128xi32>
    %c0_i32_9 = arith.constant 0 : i32
    %14 = vector.broadcast %c0_i32_9 : i32 to vector<1x128xi32>
    %15 = arith.cmpi ne, %13, %14 : vector<1x128xi32>
    %c0_i32_10 = arith.constant 0 : i32
    %16 = vector.broadcast %c0_i32_10 : i32 to vector<1x128xi32>
    %17 = arith.cmpi slt, %13, %16 : vector<1x128xi32>
    %c0_i32_11 = arith.constant 0 : i32
    %18 = arith.cmpi slt, %11, %c0_i32_11 : i32
    %19 = vector.broadcast %18 : i1 to vector<1x128xi1>
    %20 = vector.broadcast %19 : vector<1x128xi1> to vector<1x128xi1>
    %21 = arith.xori %17, %20 : vector<1x128xi1>
    %22 = arith.andi %21, %15 : vector<1x128xi1>
    %23 = vector.broadcast %11 : i32 to vector<1x128xi32>
    %24 = arith.addi %13, %23 : vector<1x128xi32>
    %25 = arith.select %22, %24, %13 : vector<1x128xi1>, vector<1x128xi32>
    %c1_i32_12 = arith.constant 1 : i32
    %26 = vector.broadcast %c1_i32_12 : i32 to vector<1x128xi32>
    %27 = arith.cmpi sge, %25, %26 : vector<1x128xi32>
    %c15_i32 = arith.constant 15 : i32
    %28 = vector.broadcast %c15_i32 : i32 to vector<1x128xi32>
    %29 = arith.cmpi slt, %25, %28 : vector<1x128xi32>
    %c0_13 = arith.constant 0 : index
    %c0_14 = arith.constant 0 : index
    %30 = vector.load %arg6[%c0_13, %c0_14] : memref<4x1xf32, #tpu.memory_space<vmem>>, vector<4x1xf32>
    %31 = vector.shape_cast %30 : vector<4x1xf32> to vector<4x1xf32>
    %32 = vector.broadcast %31 : vector<4x1xf32> to vector<4x128xf32>
    %c0_15 = arith.constant 0 : index
    %c111 = arith.constant 111 : index
    %33 = vector.load %arg10[%c0_15, %c111] : memref<4x384xf32, #tpu.memory_space<vmem>>, vector<4x128xf32>
    %c0_i32_16 = arith.constant 0 : i32
    %34 = arith.sitofp %c0_i32_16 : i32 to f32
    %35 = vector.shape_cast %27 : vector<1x128xi1> to vector<1x128xi1>
    %36 = vector.broadcast %35 : vector<1x128xi1> to vector<4x128xi1>
    %37 = vector.broadcast %34 : f32 to vector<4x128xf32>
    %38 = arith.select %36, %33, %37 : vector<4x128xi1>, vector<4x128xf32>
    %c0_17 = arith.constant 0 : index
    %c0_18 = arith.constant 0 : index
    %c0_19 = arith.constant 0 : index
    %39 = vector.load %arg5[%c0_17, %c0_18, %c0_19] : memref<9x4x4xf32, #tpu.memory_space<vmem>>, vector<1x4x4xf32>
    %40 = vector.shape_cast %39 : vector<1x4x4xf32> to vector<4x4xf32>
    %cst = arith.constant dense<0.000000e+00> : vector<4x128xf32>
    %41 = tpu.matmul %40, %38, %cst {dimension_numbers = #tpu.dot_dimension_numbers<[1], [0], [0], [1], [0, 0, 1, 1], [], []>} : vector<4x4xf32>, vector<4x128xf32>, vector<4x128xf32> -> vector<4x128xf32>
    %42 = arith.addf %32, %41 : vector<4x128xf32>
    %c0_20 = arith.constant 0 : index
    %c112_21 = arith.constant 112 : index
    %43 = vector.load %arg10[%c0_20, %c112_21] : memref<4x384xf32, #tpu.memory_space<vmem>>, vector<4x128xf32>
    %c1 = arith.constant 1 : index
    %c0_22 = arith.constant 0 : index
    %c0_23 = arith.constant 0 : index
    %44 = vector.load %arg5[%c1, %c0_22, %c0_23] : memref<9x4x4xf32, #tpu.memory_space<vmem>>, vector<1x4x4xf32>
    %45 = vector.shape_cast %44 : vector<1x4x4xf32> to vector<4x4xf32>
    %cst_24 = arith.constant dense<0.000000e+00> : vector<4x128xf32>
    %46 = tpu.matmul %45, %43, %cst_24 {dimension_numbers = #tpu.dot_dimension_numbers<[1], [0], [0], [1], [0, 0, 1, 1], [], []>} : vector<4x4xf32>, vector<4x128xf32>, vector<4x128xf32> -> vector<4x128xf32>
    %47 = arith.addf %42, %46 : vector<4x128xf32>
    %c0_25 = arith.constant 0 : index
    %c113 = arith.constant 113 : index
    %48 = vector.load %arg10[%c0_25, %c113] : memref<4x384xf32, #tpu.memory_space<vmem>>, vector<4x128xf32>
    %c0_i32_26 = arith.constant 0 : i32
    %49 = arith.sitofp %c0_i32_26 : i32 to f32
    %50 = vector.shape_cast %29 : vector<1x128xi1> to vector<1x128xi1>
    %51 = vector.broadcast %50 : vector<1x128xi1> to vector<4x128xi1>
    %52 = vector.broadcast %49 : f32 to vector<4x128xf32>
    %53 = arith.select %51, %48, %52 : vector<4x128xi1>, vector<4x128xf32>
    %c2 = arith.constant 2 : index
    %c0_27 = arith.constant 0 : index
    %c0_28 = arith.constant 0 : index
    %54 = vector.load %arg5[%c2, %c0_27, %c0_28] : memref<9x4x4xf32, #tpu.memory_space<vmem>>, vector<1x4x4xf32>
    %55 = vector.shape_cast %54 : vector<1x4x4xf32> to vector<4x4xf32>
    %cst_29 = arith.constant dense<0.000000e+00> : vector<4x128xf32>
    %56 = tpu.matmul %55, %53, %cst_29 {dimension_numbers = #tpu.dot_dimension_numbers<[1], [0], [0], [1], [0, 0, 1, 1], [], []>} : vector<4x4xf32>, vector<4x128xf32>, vector<4x128xf32> -> vector<4x128xf32>
    %57 = arith.addf %47, %56 : vector<4x128xf32>
    %c0_30 = arith.constant 0 : index
    %c127 = arith.constant 127 : index
    %58 = vector.load %arg10[%c0_30, %c127] : memref<4x384xf32, #tpu.memory_space<vmem>>, vector<4x128xf32>
    %c0_i32_31 = arith.constant 0 : i32
    %59 = arith.sitofp %c0_i32_31 : i32 to f32
    %60 = vector.shape_cast %27 : vector<1x128xi1> to vector<1x128xi1>
    %61 = vector.broadcast %60 : vector<1x128xi1> to vector<4x128xi1>
    %62 = vector.broadcast %59 : f32 to vector<4x128xf32>
    %63 = arith.select %61, %58, %62 : vector<4x128xi1>, vector<4x128xf32>
    %c3 = arith.constant 3 : index
    %c0_32 = arith.constant 0 : index
    %c0_33 = arith.constant 0 : index
    %64 = vector.load %arg5[%c3, %c0_32, %c0_33] : memref<9x4x4xf32, #tpu.memory_space<vmem>>, vector<1x4x4xf32>
    %65 = vector.shape_cast %64 : vector<1x4x4xf32> to vector<4x4xf32>
    %cst_34 = arith.constant dense<0.000000e+00> : vector<4x128xf32>
    %66 = tpu.matmul %65, %63, %cst_34 {dimension_numbers = #tpu.dot_dimension_numbers<[1], [0], [0], [1], [0, 0, 1, 1], [], []>} : vector<4x4xf32>, vector<4x128xf32>, vector<4x128xf32> -> vector<4x128xf32>
    %67 = arith.addf %57, %66 : vector<4x128xf32>
    %c0_35 = arith.constant 0 : index
    %c128_36 = arith.constant 128 : index
    %68 = vector.load %arg10[%c0_35, %c128_36] : memref<4x384xf32, #tpu.memory_space<vmem>>, vector<4x128xf32>
    %c4 = arith.constant 4 : index
    %c0_37 = arith.constant 0 : index
    %c0_38 = arith.constant 0 : index
    %69 = vector.load %arg5[%c4, %c0_37, %c0_38] : memref<9x4x4xf32, #tpu.memory_space<vmem>>, vector<1x4x4xf32>
    %70 = vector.shape_cast %69 : vector<1x4x4xf32> to vector<4x4xf32>
    %cst_39 = arith.constant dense<0.000000e+00> : vector<4x128xf32>
    %71 = tpu.matmul %70, %68, %cst_39 {dimension_numbers = #tpu.dot_dimension_numbers<[1], [0], [0], [1], [0, 0, 1, 1], [], []>} : vector<4x4xf32>, vector<4x128xf32>, vector<4x128xf32> -> vector<4x128xf32>
    %72 = arith.addf %67, %71 : vector<4x128xf32>
    %c0_40 = arith.constant 0 : index
    %c129 = arith.constant 129 : index
    %73 = vector.load %arg10[%c0_40, %c129] : memref<4x384xf32, #tpu.memory_space<vmem>>, vector<4x128xf32>
    %c0_i32_41 = arith.constant 0 : i32
    %74 = arith.sitofp %c0_i32_41 : i32 to f32
    %75 = vector.shape_cast %29 : vector<1x128xi1> to vector<1x128xi1>
    %76 = vector.broadcast %75 : vector<1x128xi1> to vector<4x128xi1>
    %77 = vector.broadcast %74 : f32 to vector<4x128xf32>
    %78 = arith.select %76, %73, %77 : vector<4x128xi1>, vector<4x128xf32>
    %c5 = arith.constant 5 : index
    %c0_42 = arith.constant 0 : index
    %c0_43 = arith.constant 0 : index
    %79 = vector.load %arg5[%c5, %c0_42, %c0_43] : memref<9x4x4xf32, #tpu.memory_space<vmem>>, vector<1x4x4xf32>
    %80 = vector.shape_cast %79 : vector<1x4x4xf32> to vector<4x4xf32>
    %cst_44 = arith.constant dense<0.000000e+00> : vector<4x128xf32>
    %81 = tpu.matmul %80, %78, %cst_44 {dimension_numbers = #tpu.dot_dimension_numbers<[1], [0], [0], [1], [0, 0, 1, 1], [], []>} : vector<4x4xf32>, vector<4x128xf32>, vector<4x128xf32> -> vector<4x128xf32>
    %82 = arith.addf %72, %81 : vector<4x128xf32>
    %c0_45 = arith.constant 0 : index
    %c143 = arith.constant 143 : index
    %83 = vector.load %arg10[%c0_45, %c143] : memref<4x384xf32, #tpu.memory_space<vmem>>, vector<4x128xf32>
    %c0_i32_46 = arith.constant 0 : i32
    %84 = arith.sitofp %c0_i32_46 : i32 to f32
    %85 = vector.shape_cast %27 : vector<1x128xi1> to vector<1x128xi1>
    %86 = vector.broadcast %85 : vector<1x128xi1> to vector<4x128xi1>
    %87 = vector.broadcast %84 : f32 to vector<4x128xf32>
    %88 = arith.select %86, %83, %87 : vector<4x128xi1>, vector<4x128xf32>
    %c6 = arith.constant 6 : index
    %c0_47 = arith.constant 0 : index
    %c0_48 = arith.constant 0 : index
    %89 = vector.load %arg5[%c6, %c0_47, %c0_48] : memref<9x4x4xf32, #tpu.memory_space<vmem>>, vector<1x4x4xf32>
    %90 = vector.shape_cast %89 : vector<1x4x4xf32> to vector<4x4xf32>
    %cst_49 = arith.constant dense<0.000000e+00> : vector<4x128xf32>
    %91 = tpu.matmul %90, %88, %cst_49 {dimension_numbers = #tpu.dot_dimension_numbers<[1], [0], [0], [1], [0, 0, 1, 1], [], []>} : vector<4x4xf32>, vector<4x128xf32>, vector<4x128xf32> -> vector<4x128xf32>
    %92 = arith.addf %82, %91 : vector<4x128xf32>
    %c0_50 = arith.constant 0 : index
    %c144 = arith.constant 144 : index
    %93 = vector.load %arg10[%c0_50, %c144] : memref<4x384xf32, #tpu.memory_space<vmem>>, vector<4x128xf32>
    %c7 = arith.constant 7 : index
    %c0_51 = arith.constant 0 : index
    %c0_52 = arith.constant 0 : index
    %94 = vector.load %arg5[%c7, %c0_51, %c0_52] : memref<9x4x4xf32, #tpu.memory_space<vmem>>, vector<1x4x4xf32>
    %95 = vector.shape_cast %94 : vector<1x4x4xf32> to vector<4x4xf32>
    %cst_53 = arith.constant dense<0.000000e+00> : vector<4x128xf32>
    %96 = tpu.matmul %95, %93, %cst_53 {dimension_numbers = #tpu.dot_dimension_numbers<[1], [0], [0], [1], [0, 0, 1, 1], [], []>} : vector<4x4xf32>, vector<4x128xf32>, vector<4x128xf32> -> vector<4x128xf32>
    %97 = arith.addf %92, %96 : vector<4x128xf32>
    %c0_54 = arith.constant 0 : index
    %c145 = arith.constant 145 : index
    %98 = vector.load %arg10[%c0_54, %c145] : memref<4x384xf32, #tpu.memory_space<vmem>>, vector<4x128xf32>
    %c0_i32_55 = arith.constant 0 : i32
    %99 = arith.sitofp %c0_i32_55 : i32 to f32
    %100 = vector.shape_cast %29 : vector<1x128xi1> to vector<1x128xi1>
    %101 = vector.broadcast %100 : vector<1x128xi1> to vector<4x128xi1>
    %102 = vector.broadcast %99 : f32 to vector<4x128xf32>
    %103 = arith.select %101, %98, %102 : vector<4x128xi1>, vector<4x128xf32>
    %c8 = arith.constant 8 : index
    %c0_56 = arith.constant 0 : index
    %c0_57 = arith.constant 0 : index
    %104 = vector.load %arg5[%c8, %c0_56, %c0_57] : memref<9x4x4xf32, #tpu.memory_space<vmem>>, vector<1x4x4xf32>
    %105 = vector.shape_cast %104 : vector<1x4x4xf32> to vector<4x4xf32>
    %cst_58 = arith.constant dense<0.000000e+00> : vector<4x128xf32>
    %106 = tpu.matmul %105, %103, %cst_58 {dimension_numbers = #tpu.dot_dimension_numbers<[1], [0], [0], [1], [0, 0, 1, 1], [], []>} : vector<4x4xf32>, vector<4x128xf32>, vector<4x128xf32> -> vector<4x128xf32>
    %107 = arith.addf %97, %106 : vector<4x128xf32>
    %c0_59 = arith.constant 0 : index
    %c0_60 = arith.constant 0 : index
    %c0_61 = arith.constant 0 : index
    %c0_62 = arith.constant 0 : index
    %108 = vector.load %arg7[%c0_59, %c0_60, %c0_61, %c0_62] : memref<1x1x4x32xf32, #tpu.memory_space<vmem>>, vector<1x1x4x32xf32>
    %109 = vector.shape_cast %108 : vector<1x1x4x32xf32> to vector<4x32xf32>
    %c0_63 = arith.constant 0 : index
    %c0_64 = arith.constant 0 : index
    %110 = vector.load %arg8[%c0_63, %c0_64] : memref<8x16xf32, #tpu.memory_space<vmem>>, vector<8x16xf32>
    %111 = vector.extract_strided_slice %109 {offsets = [0, 0], sizes = [4, 8], strides = [1, 1]} : vector<4x32xf32> to vector<4x8xf32>
    %cst_65 = arith.constant dense<0.000000e+00> : vector<4x16xf32>
    %112 = tpu.matmul %111, %110, %cst_65 {dimension_numbers = #tpu.dot_dimension_numbers<[1], [0], [0], [1], [0, 0, 1, 1], [], []>} : vector<4x8xf32>, vector<8x16xf32>, vector<4x16xf32> -> vector<4x16xf32>
    %113 = vector.extract_strided_slice %109 {offsets = [0, 8], sizes = [4, 8], strides = [1, 1]} : vector<4x32xf32> to vector<4x8xf32>
    %cst_66 = arith.constant dense<0.000000e+00> : vector<4x16xf32>
    %114 = tpu.matmul %113, %110, %cst_66 {dimension_numbers = #tpu.dot_dimension_numbers<[1], [0], [0], [1], [0, 0, 1, 1], [], []>} : vector<4x8xf32>, vector<8x16xf32>, vector<4x16xf32> -> vector<4x16xf32>
    %115 = vector.extract_strided_slice %109 {offsets = [0, 16], sizes = [4, 8], strides = [1, 1]} : vector<4x32xf32> to vector<4x8xf32>
    %cst_67 = arith.constant dense<0.000000e+00> : vector<4x16xf32>
    %116 = tpu.matmul %115, %110, %cst_67 {dimension_numbers = #tpu.dot_dimension_numbers<[1], [0], [0], [1], [0, 0, 1, 1], [], []>} : vector<4x8xf32>, vector<8x16xf32>, vector<4x16xf32> -> vector<4x16xf32>
    %117 = vector.extract_strided_slice %109 {offsets = [0, 24], sizes = [4, 8], strides = [1, 1]} : vector<4x32xf32> to vector<4x8xf32>
    %cst_68 = arith.constant dense<0.000000e+00> : vector<4x16xf32>
    %118 = tpu.matmul %117, %110, %cst_68 {dimension_numbers = #tpu.dot_dimension_numbers<[1], [0], [0], [1], [0, 0, 1, 1], [], []>} : vector<4x8xf32>, vector<8x16xf32>, vector<4x16xf32> -> vector<4x16xf32>
    %119 = tpu.concatenate %112, %112, %114, %114, %116, %116, %118, %118 in 1 : vector<4x16xf32>, vector<4x16xf32>, vector<4x16xf32>, vector<4x16xf32>, vector<4x16xf32>, vector<4x16xf32>, vector<4x16xf32>, vector<4x16xf32> -> vector<4x128xf32>
    %c0_69 = arith.constant 0 : index
    %120 = memref.load %arg2[%c0_69] : memref<1xf32, #tpu.memory_space<smem>>
    %121 = vector.broadcast %120 : f32 to vector<4x128xf32>
    %122 = arith.mulf %121, %119 : vector<4x128xf32>
    %123 = arith.addf %107, %122 : vector<4x128xf32>
    %c0_70 = arith.constant 0 : index
    %c0_71 = arith.constant 0 : index
    %c0_72 = arith.constant 0 : index
    %124 = vector.load %arg9[%c0_70, %c0_71, %c0_72] : memref<1x4x128xf32, #tpu.memory_space<vmem>>, vector<1x4x128xf32>
    %125 = vector.shape_cast %124 : vector<1x4x128xf32> to vector<4x128xf32>
    %126 = vector.shape_cast %123 : vector<4x128xf32> to vector<1x4x128xf32>
    tpu.vector_store %arg9[%c0_70, %c0_71, %c0_72], %126 {strides = array<i32>} : memref<1x4x128xf32, #tpu.memory_space<vmem>>, vector<1x4x128xf32>,
    return
  }
  func.func @transform_0(%arg0: i32, %arg1: i32) -> i32 {
    %c0_i32 = arith.constant 0 : i32
    %c0_i32_0 = arith.constant 0 : i32
    return %c0_i32 : i32
  }
  func.func @transform_1(%arg0: i32, %arg1: i32) -> (i32, i32, i32) {
    %c0_i32 = arith.constant 0 : i32
    %c0_i32_0 = arith.constant 0 : i32
    return %arg0, %c0_i32, %arg1 : i32, i32, i32
  }
  func.func @transform_2(%arg0: i32, %arg1: i32) -> (i32, i32, i32, i32) {
    %c0_i32 = arith.constant 0 : i32
    %c0_i32_0 = arith.constant 0 : i32
    %c0_i32_1 = arith.constant 0 : i32
    return %arg0, %arg1, %c0_i32, %c0_i32_0 : i32, i32, i32, i32
  }
  func.func @transform_3(%arg0: i32, %arg1: i32) -> (i32, i32, i32) {
    %c0_i32 = arith.constant 0 : i32
    %c0_i32_0 = arith.constant 0 : i32
    %c0_i32_1 = arith.constant 0 : i32
    %c0_i32_2 = arith.constant 0 : i32
    return %c0_i32, %c0_i32_0, %c0_i32_1 : i32, i32, i32
  }
  func.func @transform_4(%arg0: i32, %arg1: i32) -> (i32, i32) {
    %c0_i32 = arith.constant 0 : i32
    %c0_i32_0 = arith.constant 0 : i32
    %c0_i32_1 = arith.constant 0 : i32
    return %c0_i32, %c0_i32_0 : i32, i32
  }
  func.func @transform_5(%arg0: i32, %arg1: i32) -> (i32, i32, i32, i32) {
    %c0_i32 = arith.constant 0 : i32
    %c0_i32_0 = arith.constant 0 : i32
    %c0_i32_1 = arith.constant 0 : i32
    return %arg0, %arg1, %c0_i32, %c0_i32_0 : i32, i32, i32, i32
  }
  func.func @transform_6(%arg0: i32, %arg1: i32) -> (i32, i32) {
    %c0_i32 = arith.constant 0 : i32
    %c0_i32_0 = arith.constant 0 : i32
    %c0_i32_1 = arith.constant 0 : i32
    return %c0_i32, %c0_i32_0 : i32, i32
  }
  func.func @transform_7(%arg0: i32, %arg1: i32) -> (i32, i32, i32) {
    %c0_i32 = arith.constant 0 : i32
    %c0_i32_0 = arith.constant 0 : i32
    return %arg0, %c0_i32, %arg1 : i32, i32, i32
  }
}

module attributes {stable_mosaic.version = 11 : i64} {
  func.func @_skip_plus_kernel(%arg0: i32, %arg1: i32, %arg2: memref<1xf32, #tpu.memory_space<smem>>, %arg3: memref<1x4x128xf32, #tpu.memory_space<vmem>>, %arg4: memref<1x1x4x32xf32, #tpu.memory_space<vmem>>, %arg5: memref<9x4x4xf32, #tpu.memory_space<vmem>>, %arg6: memref<4x1xf32, #tpu.memory_space<vmem>>, %arg7: memref<1x1x4x32xf32, #tpu.memory_space<vmem>>, %arg8: memref<8x16xf32, #tpu.memory_space<vmem>>, %arg9: memref<1x4x128xf32, #tpu.memory_space<vmem>>, %arg10: memref<4x384xf32, #tpu.memory_space<vmem>>) attributes {dimension_semantics = [#tpu.dimension_semantics<parallel>, #tpu.dimension_semantics<parallel>], iteration_bounds = array<i64: 2, 2>, scalar_prefetch = 0 : i64, scratch_operands = 1 : i64, tpu.core_type = #tpu.core_type<tc>, window_params = [{transform_indices = @transform_0, window_bounds = array<i64: 1>}, {transform_indices = @transform_1, window_bounds = array<i64: 1, 4, 128>}, {transform_indices = @transform_2, window_bounds = array<i64: 1, 1, 4, 32>}, {pipeline_mode = #tpu.pipeline_mode<synchronous>, transform_indices = @transform_3, window_bounds = array<i64: 9, 4, 4>}, {pipeline_mode = #tpu.pipeline_mode<synchronous>, transform_indices = @transform_4, window_bounds = array<i64: 4, 1>}, {transform_indices = @transform_5, window_bounds = array<i64: 1, 1, 4, 32>}, {pipeline_mode = #tpu.pipeline_mode<synchronous>, transform_indices = @transform_6, window_bounds = array<i64: 8, 16>}, {transform_indices = @transform_7, window_bounds = array<i64: 1, 4, 128>}]} {
    %c0 = arith.constant 0 : index
    %c0_0 = arith.constant 0 : index
    %c0_1 = arith.constant 0 : index
    %c0_2 = arith.constant 0 : index
    %0 = vector.load %arg4[%c0, %c0_0, %c0_1, %c0_2] : memref<1x1x4x32xf32, #tpu.memory_space<vmem>>, vector<1x1x4x32xf32>
    %1 = vector.shape_cast %0 : vector<1x1x4x32xf32> to vector<4x32xf32>
    %2 = vector.extract_strided_slice %1 {offsets = [0, 0], sizes = [4, 16], strides = [1, 1]} : vector<4x32xf32> to vector<4x16xf32>
    %c0_3 = arith.constant 0 : index
    %c112 = arith.constant 112 : index
    %3 = vector.load %arg10[%c0_3, %c112] : memref<4x384xf32, #tpu.memory_space<vmem>>, vector<4x16xf32>
    tpu.vector_store %arg10[%c0_3, %c112], %2 {strides = array<i32>} : memref<4x384xf32, #tpu.memory_space<vmem>>, vector<4x16xf32>,
    %c0_4 = arith.constant 0 : index
    %c0_5 = arith.constant 0 : index
    %c0_6 = arith.constant 0 : index
    %4 = vector.load %arg3[%c0_4, %c0_5, %c0_6] : memref<1x4x128xf32, #tpu.memory_space<vmem>>, vector<1x4x128xf32>
    %5 = vector.shape_cast %4 : vector<1x4x128xf32> to vector<4x128xf32>
    %c0_7 = arith.constant 0 : index
    %c128 = arith.constant 128 : index
    %6 = vector.load %arg10[%c0_7, %c128] : memref<4x384xf32, #tpu.memory_space<vmem>>, vector<4x128xf32>
    tpu.vector_store %arg10[%c0_7, %c128], %5 {strides = array<i32>} : memref<4x384xf32, #tpu.memory_space<vmem>>, vector<4x128xf32>,
    %7 = vector.extract_strided_slice %1 {offsets = [0, 16], sizes = [4, 16], strides = [1, 1]} : vector<4x32xf32> to vector<4x16xf32>
    %c0_8 = arith.constant 0 : index
    %c256 = arith.constant 256 : index
    %8 = vector.load %arg10[%c0_8, %c256] : memref<4x384xf32, #tpu.memory_space<vmem>>, vector<4x16xf32>
    tpu.vector_store %arg10[%c0_8, %c256], %7 {strides = array<i32>} : memref<4x384xf32, #tpu.memory_space<vmem>>, vector<4x16xf32>,
    %9 = tpu.iota {dimensions = array<i32: 1>} : vector<1x128xi32>
    %c16_i32 = arith.constant 16 : i32
    %c0_i32 = arith.constant 0 : i32
    %10 = arith.cmpi eq, %c16_i32, %c0_i32 : i32
    %c1_i32 = arith.constant 1 : i32
    %11 = arith.select %10, %c1_i32, %c16_i32 : i32
    %12 = vector.broadcast %11 : i32 to vector<1x128xi32>
    %13 = arith.remsi %9, %12 : vector<1x128xi32>
    %c0_i32_9 = arith.constant 0 : i32
    %14 = vector.broadcast %c0_i32_9 : i32 to vector<1x128xi32>
    %15 = arith.cmpi ne, %13, %14 : vector<1x128xi32>
    %c0_i32_10 = arith.constant 0 : i32
    %16 = vector.broadcast %c0_i32_10 : i32 to vector<1x128xi32>
    %17 = arith.cmpi slt, %13, %16 : vector<1x128xi32>
    %c0_i32_11 = arith.constant 0 : i32
    %18 = arith.cmpi slt, %11, %c0_i32_11 : i32
    %19 = vector.broadcast %18 : i1 to vector<1x128xi1>
    %20 = vector.broadcast %19 : vector<1x128xi1> to vector<1x128xi1>
    %21 = arith.xori %17, %20 : vector<1x128xi1>
    %22 = arith.andi %21, %15 : vector<1x128xi1>
    %23 = vector.broadcast %11 : i32 to vector<1x128xi32>
    %24 = arith.addi %13, %23 : vector<1x128xi32>
    %25 = arith.select %22, %24, %13 : vector<1x128xi1>, vector<1x128xi32>
    %c1_i32_12 = arith.constant 1 : i32
    %26 = vector.broadcast %c1_i32_12 : i32 to vector<1x128xi32>
    %27 = arith.cmpi sge, %25, %26 : vector<1x128xi32>
    %c15_i32 = arith.constant 15 : i32
    %28 = vector.broadcast %c15_i32 : i32 to vector<1x128xi32>
    %29 = arith.cmpi slt, %25, %28 : vector<1x128xi32>
    %c0_13 = arith.constant 0 : index
    %c0_14 = arith.constant 0 : index
    %30 = vector.load %arg6[%c0_13, %c0_14] : memref<4x1xf32, #tpu.memory_space<vmem>>, vector<4x1xf32>
    %31 = vector.shape_cast %30 : vector<4x1xf32> to vector<4x1xf32>
    %32 = vector.broadcast %31 : vector<4x1xf32> to vector<4x128xf32>
    %c0_15 = arith.constant 0 : index
    %c111 = arith.constant 111 : index
    %33 = vector.load %arg10[%c0_15, %c111] : memref<4x384xf32, #tpu.memory_space<vmem>>, vector<4x128xf32>
    %c0_i32_16 = arith.constant 0 : i32
    %34 = arith.sitofp %c0_i32_16 : i32 to f32
    %35 = vector.shape_cast %27 : vector<1x128xi1> to vector<1x128xi1>
    %36 = vector.broadcast %35 : vector<1x128xi1> to vector<4x128xi1>
    %37 = vector.broadcast %34 : f32 to vector<4x128xf32>
    %38 = arith.select %36, %33, %37 : vector<4x128xi1>, vector<4x128xf32>
    %c0_17 = arith.constant 0 : index
    %c0_18 = arith.constant 0 : index
    %c0_19 = arith.constant 0 : index
    %39 = vector.load %arg5[%c0_17, %c0_18, %c0_19] : memref<9x4x4xf32, #tpu.memory_space<vmem>>, vector<1x4x4xf32>
    %40 = vector.shape_cast %39 : vector<1x4x4xf32> to vector<4x4xf32>
    %cst = arith.constant dense<0.000000e+00> : vector<4x128xf32>
    %41 = tpu.matmul %40, %38, %cst {dimension_numbers = #tpu.dot_dimension_numbers<[1], [0], [0], [1], [0, 0, 1, 1], [], []>} : vector<4x4xf32>, vector<4x128xf32>, vector<4x128xf32> -> vector<4x128xf32>
    %42 = arith.addf %32, %41 : vector<4x128xf32>
    %c0_20 = arith.constant 0 : index
    %c112_21 = arith.constant 112 : index
    %43 = vector.load %arg10[%c0_20, %c112_21] : memref<4x384xf32, #tpu.memory_space<vmem>>, vector<4x128xf32>
    %c1 = arith.constant 1 : index
    %c0_22 = arith.constant 0 : index
    %c0_23 = arith.constant 0 : index
    %44 = vector.load %arg5[%c1, %c0_22, %c0_23] : memref<9x4x4xf32, #tpu.memory_space<vmem>>, vector<1x4x4xf32>
    %45 = vector.shape_cast %44 : vector<1x4x4xf32> to vector<4x4xf32>
    %cst_24 = arith.constant dense<0.000000e+00> : vector<4x128xf32>
    %46 = tpu.matmul %45, %43, %cst_24 {dimension_numbers = #tpu.dot_dimension_numbers<[1], [0], [0], [1], [0, 0, 1, 1], [], []>} : vector<4x4xf32>, vector<4x128xf32>, vector<4x128xf32> -> vector<4x128xf32>
    %47 = arith.addf %42, %46 : vector<4x128xf32>
    %c0_25 = arith.constant 0 : index
    %c113 = arith.constant 113 : index
    %48 = vector.load %arg10[%c0_25, %c113] : memref<4x384xf32, #tpu.memory_space<vmem>>, vector<4x128xf32>
    %c0_i32_26 = arith.constant 0 : i32
    %49 = arith.sitofp %c0_i32_26 : i32 to f32
    %50 = vector.shape_cast %29 : vector<1x128xi1> to vector<1x128xi1>
    %51 = vector.broadcast %50 : vector<1x128xi1> to vector<4x128xi1>
    %52 = vector.broadcast %49 : f32 to vector<4x128xf32>
    %53 = arith.select %51, %48, %52 : vector<4x128xi1>, vector<4x128xf32>
    %c2 = arith.constant 2 : index
    %c0_27 = arith.constant 0 : index
    %c0_28 = arith.constant 0 : index
    %54 = vector.load %arg5[%c2, %c0_27, %c0_28] : memref<9x4x4xf32, #tpu.memory_space<vmem>>, vector<1x4x4xf32>
    %55 = vector.shape_cast %54 : vector<1x4x4xf32> to vector<4x4xf32>
    %cst_29 = arith.constant dense<0.000000e+00> : vector<4x128xf32>
    %56 = tpu.matmul %55, %53, %cst_29 {dimension_numbers = #tpu.dot_dimension_numbers<[1], [0], [0], [1], [0, 0, 1, 1], [], []>} : vector<4x4xf32>, vector<4x128xf32>, vector<4x128xf32> -> vector<4x128xf32>
    %57 = arith.addf %47, %56 : vector<4x128xf32>
    %c0_30 = arith.constant 0 : index
    %c127 = arith.constant 127 : index
    %58 = vector.load %arg10[%c0_30, %c127] : memref<4x384xf32, #tpu.memory_space<vmem>>, vector<4x128xf32>
    %c0_i32_31 = arith.constant 0 : i32
    %59 = arith.sitofp %c0_i32_31 : i32 to f32
    %60 = vector.shape_cast %27 : vector<1x128xi1> to vector<1x128xi1>
    %61 = vector.broadcast %60 : vector<1x128xi1> to vector<4x128xi1>
    %62 = vector.broadcast %59 : f32 to vector<4x128xf32>
    %63 = arith.select %61, %58, %62 : vector<4x128xi1>, vector<4x128xf32>
    %c3 = arith.constant 3 : index
    %c0_32 = arith.constant 0 : index
    %c0_33 = arith.constant 0 : index
    %64 = vector.load %arg5[%c3, %c0_32, %c0_33] : memref<9x4x4xf32, #tpu.memory_space<vmem>>, vector<1x4x4xf32>
    %65 = vector.shape_cast %64 : vector<1x4x4xf32> to vector<4x4xf32>
    %cst_34 = arith.constant dense<0.000000e+00> : vector<4x128xf32>
    %66 = tpu.matmul %65, %63, %cst_34 {dimension_numbers = #tpu.dot_dimension_numbers<[1], [0], [0], [1], [0, 0, 1, 1], [], []>} : vector<4x4xf32>, vector<4x128xf32>, vector<4x128xf32> -> vector<4x128xf32>
    %67 = arith.addf %57, %66 : vector<4x128xf32>
    %c0_35 = arith.constant 0 : index
    %c128_36 = arith.constant 128 : index
    %68 = vector.load %arg10[%c0_35, %c128_36] : memref<4x384xf32, #tpu.memory_space<vmem>>, vector<4x128xf32>
    %c4 = arith.constant 4 : index
    %c0_37 = arith.constant 0 : index
    %c0_38 = arith.constant 0 : index
    %69 = vector.load %arg5[%c4, %c0_37, %c0_38] : memref<9x4x4xf32, #tpu.memory_space<vmem>>, vector<1x4x4xf32>
    %70 = vector.shape_cast %69 : vector<1x4x4xf32> to vector<4x4xf32>
    %cst_39 = arith.constant dense<0.000000e+00> : vector<4x128xf32>
    %71 = tpu.matmul %70, %68, %cst_39 {dimension_numbers = #tpu.dot_dimension_numbers<[1], [0], [0], [1], [0, 0, 1, 1], [], []>} : vector<4x4xf32>, vector<4x128xf32>, vector<4x128xf32> -> vector<4x128xf32>
    %72 = arith.addf %67, %71 : vector<4x128xf32>
    %c0_40 = arith.constant 0 : index
    %c129 = arith.constant 129 : index
    %73 = vector.load %arg10[%c0_40, %c129] : memref<4x384xf32, #tpu.memory_space<vmem>>, vector<4x128xf32>
    %c0_i32_41 = arith.constant 0 : i32
    %74 = arith.sitofp %c0_i32_41 : i32 to f32
    %75 = vector.shape_cast %29 : vector<1x128xi1> to vector<1x128xi1>
    %76 = vector.broadcast %75 : vector<1x128xi1> to vector<4x128xi1>
    %77 = vector.broadcast %74 : f32 to vector<4x128xf32>
    %78 = arith.select %76, %73, %77 : vector<4x128xi1>, vector<4x128xf32>
    %c5 = arith.constant 5 : index
    %c0_42 = arith.constant 0 : index
    %c0_43 = arith.constant 0 : index
    %79 = vector.load %arg5[%c5, %c0_42, %c0_43] : memref<9x4x4xf32, #tpu.memory_space<vmem>>, vector<1x4x4xf32>
    %80 = vector.shape_cast %79 : vector<1x4x4xf32> to vector<4x4xf32>
    %cst_44 = arith.constant dense<0.000000e+00> : vector<4x128xf32>
    %81 = tpu.matmul %80, %78, %cst_44 {dimension_numbers = #tpu.dot_dimension_numbers<[1], [0], [0], [1], [0, 0, 1, 1], [], []>} : vector<4x4xf32>, vector<4x128xf32>, vector<4x128xf32> -> vector<4x128xf32>
    %82 = arith.addf %72, %81 : vector<4x128xf32>
    %c0_45 = arith.constant 0 : index
    %c143 = arith.constant 143 : index
    %83 = vector.load %arg10[%c0_45, %c143] : memref<4x384xf32, #tpu.memory_space<vmem>>, vector<4x128xf32>
    %c0_i32_46 = arith.constant 0 : i32
    %84 = arith.sitofp %c0_i32_46 : i32 to f32
    %85 = vector.shape_cast %27 : vector<1x128xi1> to vector<1x128xi1>
    %86 = vector.broadcast %85 : vector<1x128xi1> to vector<4x128xi1>
    %87 = vector.broadcast %84 : f32 to vector<4x128xf32>
    %88 = arith.select %86, %83, %87 : vector<4x128xi1>, vector<4x128xf32>
    %c6 = arith.constant 6 : index
    %c0_47 = arith.constant 0 : index
    %c0_48 = arith.constant 0 : index
    %89 = vector.load %arg5[%c6, %c0_47, %c0_48] : memref<9x4x4xf32, #tpu.memory_space<vmem>>, vector<1x4x4xf32>
    %90 = vector.shape_cast %89 : vector<1x4x4xf32> to vector<4x4xf32>
    %cst_49 = arith.constant dense<0.000000e+00> : vector<4x128xf32>
    %91 = tpu.matmul %90, %88, %cst_49 {dimension_numbers = #tpu.dot_dimension_numbers<[1], [0], [0], [1], [0, 0, 1, 1], [], []>} : vector<4x4xf32>, vector<4x128xf32>, vector<4x128xf32> -> vector<4x128xf32>
    %92 = arith.addf %82, %91 : vector<4x128xf32>
    %c0_50 = arith.constant 0 : index
    %c144 = arith.constant 144 : index
    %93 = vector.load %arg10[%c0_50, %c144] : memref<4x384xf32, #tpu.memory_space<vmem>>, vector<4x128xf32>
    %c7 = arith.constant 7 : index
    %c0_51 = arith.constant 0 : index
    %c0_52 = arith.constant 0 : index
    %94 = vector.load %arg5[%c7, %c0_51, %c0_52] : memref<9x4x4xf32, #tpu.memory_space<vmem>>, vector<1x4x4xf32>
    %95 = vector.shape_cast %94 : vector<1x4x4xf32> to vector<4x4xf32>
    %cst_53 = arith.constant dense<0.000000e+00> : vector<4x128xf32>
    %96 = tpu.matmul %95, %93, %cst_53 {dimension_numbers = #tpu.dot_dimension_numbers<[1], [0], [0], [1], [0, 0, 1, 1], [], []>} : vector<4x4xf32>, vector<4x128xf32>, vector<4x128xf32> -> vector<4x128xf32>
    %97 = arith.addf %92, %96 : vector<4x128xf32>
    %c0_54 = arith.constant 0 : index
    %c145 = arith.constant 145 : index
    %98 = vector.load %arg10[%c0_54, %c145] : memref<4x384xf32, #tpu.memory_space<vmem>>, vector<4x128xf32>
    %c0_i32_55 = arith.constant 0 : i32
    %99 = arith.sitofp %c0_i32_55 : i32 to f32
    %100 = vector.shape_cast %29 : vector<1x128xi1> to vector<1x128xi1>
    %101 = vector.broadcast %100 : vector<1x128xi1> to vector<4x128xi1>
    %102 = vector.broadcast %99 : f32 to vector<4x128xf32>
    %103 = arith.select %101, %98, %102 : vector<4x128xi1>, vector<4x128xf32>
    %c8 = arith.constant 8 : index
    %c0_56 = arith.constant 0 : index
    %c0_57 = arith.constant 0 : index
    %104 = vector.load %arg5[%c8, %c0_56, %c0_57] : memref<9x4x4xf32, #tpu.memory_space<vmem>>, vector<1x4x4xf32>
    %105 = vector.shape_cast %104 : vector<1x4x4xf32> to vector<4x4xf32>
    %cst_58 = arith.constant dense<0.000000e+00> : vector<4x128xf32>
    %106 = tpu.matmul %105, %103, %cst_58 {dimension_numbers = #tpu.dot_dimension_numbers<[1], [0], [0], [1], [0, 0, 1, 1], [], []>} : vector<4x4xf32>, vector<4x128xf32>, vector<4x128xf32> -> vector<4x128xf32>
    %107 = arith.addf %97, %106 : vector<4x128xf32>
    %c0_59 = arith.constant 0 : index
    %c0_60 = arith.constant 0 : index
    %c0_61 = arith.constant 0 : index
    %c0_62 = arith.constant 0 : index
    %108 = vector.load %arg7[%c0_59, %c0_60, %c0_61, %c0_62] : memref<1x1x4x32xf32, #tpu.memory_space<vmem>>, vector<1x1x4x32xf32>
    %109 = vector.shape_cast %108 : vector<1x1x4x32xf32> to vector<4x32xf32>
    %c0_63 = arith.constant 0 : index
    %c0_64 = arith.constant 0 : index
    %110 = vector.load %arg8[%c0_63, %c0_64] : memref<8x16xf32, #tpu.memory_space<vmem>>, vector<8x16xf32>
    %111 = vector.extract_strided_slice %109 {offsets = [0, 0], sizes = [4, 8], strides = [1, 1]} : vector<4x32xf32> to vector<4x8xf32>
    %cst_65 = arith.constant dense<0.000000e+00> : vector<4x16xf32>
    %112 = tpu.matmul %111, %110, %cst_65 {dimension_numbers = #tpu.dot_dimension_numbers<[1], [0], [0], [1], [0, 0, 1, 1], [], []>} : vector<4x8xf32>, vector<8x16xf32>, vector<4x16xf32> -> vector<4x16xf32>
    %113 = vector.extract_strided_slice %109 {offsets = [0, 8], sizes = [4, 8], strides = [1, 1]} : vector<4x32xf32> to vector<4x8xf32>
    %cst_66 = arith.constant dense<0.000000e+00> : vector<4x16xf32>
    %114 = tpu.matmul %113, %110, %cst_66 {dimension_numbers = #tpu.dot_dimension_numbers<[1], [0], [0], [1], [0, 0, 1, 1], [], []>} : vector<4x8xf32>, vector<8x16xf32>, vector<4x16xf32> -> vector<4x16xf32>
    %115 = vector.extract_strided_slice %109 {offsets = [0, 16], sizes = [4, 8], strides = [1, 1]} : vector<4x32xf32> to vector<4x8xf32>
    %cst_67 = arith.constant dense<0.000000e+00> : vector<4x16xf32>
    %116 = tpu.matmul %115, %110, %cst_67 {dimension_numbers = #tpu.dot_dimension_numbers<[1], [0], [0], [1], [0, 0, 1, 1], [], []>} : vector<4x8xf32>, vector<8x16xf32>, vector<4x16xf32> -> vector<4x16xf32>
    %117 = vector.extract_strided_slice %109 {offsets = [0, 24], sizes = [4, 8], strides = [1, 1]} : vector<4x32xf32> to vector<4x8xf32>
    %cst_68 = arith.constant dense<0.000000e+00> : vector<4x16xf32>
    %118 = tpu.matmul %117, %110, %cst_68 {dimension_numbers = #tpu.dot_dimension_numbers<[1], [0], [0], [1], [0, 0, 1, 1], [], []>} : vector<4x8xf32>, vector<8x16xf32>, vector<4x16xf32> -> vector<4x16xf32>
    %119 = tpu.concatenate %112, %112, %114, %114, %116, %116, %118, %118 in 1 : vector<4x16xf32>, vector<4x16xf32>, vector<4x16xf32>, vector<4x16xf32>, vector<4x16xf32>, vector<4x16xf32>, vector<4x16xf32>, vector<4x16xf32> -> vector<4x128xf32>
    %c0_69 = arith.constant 0 : index
    %120 = memref.load %arg2[%c0_69] : memref<1xf32, #tpu.memory_space<smem>>
    %121 = vector.broadcast %120 : f32 to vector<4x128xf32>
    %122 = arith.mulf %121, %119 : vector<4x128xf32>
    %123 = arith.addf %107, %122 : vector<4x128xf32>
    %c0_70 = arith.constant 0 : index
    %c0_71 = arith.constant 0 : index
    %c0_72 = arith.constant 0 : index
    %124 = vector.load %arg9[%c0_70, %c0_71, %c0_72] : memref<1x4x128xf32, #tpu.memory_space<vmem>>, vector<1x4x128xf32>
    %125 = vector.shape_cast %124 : vector<1x4x128xf32> to vector<4x128xf32>
    %126 = vector.shape_cast %123 : vector<4x128xf32> to vector<1x4x128xf32>
    tpu.vector_store %arg9[%c0_70, %c0_71, %c0_72], %126 {strides = array<i32>} : memref<1x4x128xf32, #tpu.memory_space<vmem>>, vector<1x4x128xf32>,
    return
  }
  func.func @transform_0(%arg0: i32, %arg1: i32) -> i32 {
    %c0_i32 = arith.constant 0 : i32
    %c0_i32_0 = arith.constant 0 : i32
    return %c0_i32 : i32
  }
  func.func @transform_1(%arg0: i32, %arg1: i32) -> (i32, i32, i32) {
    %c0_i32 = arith.constant 0 : i32
    %c0_i32_0 = arith.constant 0 : i32
    return %arg0, %c0_i32, %arg1 : i32, i32, i32
  }
  func.func @transform_2(%arg0: i32, %arg1: i32) -> (i32, i32, i32, i32) {
    %c0_i32 = arith.constant 0 : i32
    %c0_i32_0 = arith.constant 0 : i32
    %c0_i32_1 = arith.constant 0 : i32
    return %arg0, %arg1, %c0_i32, %c0_i32_0 : i32, i32, i32, i32
  }
  func.func @transform_3(%arg0: i32, %arg1: i32) -> (i32, i32, i32) {
    %c0_i32 = arith.constant 0 : i32
    %c0_i32_0 = arith.constant 0 : i32
    %c0_i32_1 = arith.constant 0 : i32
    %c0_i32_2 = arith.constant 0 : i32
    return %c0_i32, %c0_i32_0, %c0_i32_1 : i32, i32, i32
  }
  func.func @transform_4(%arg0: i32, %arg1: i32) -> (i32, i32) {
    %c0_i32 = arith.constant 0 : i32
    %c0_i32_0 = arith.constant 0 : i32
    %c0_i32_1 = arith.constant 0 : i32
    return %c0_i32, %c0_i32_0 : i32, i32
  }
  func.func @transform_5(%arg0: i32, %arg1: i32) -> (i32, i32, i32, i32) {
    %c0_i32 = arith.constant 0 : i32
    %c0_i32_0 = arith.constant 0 : i32
    %c0_i32_1 = arith.constant 0 : i32
    return %arg0, %arg1, %c0_i32, %c0_i32_0 : i32, i32, i32, i32
  }
  func.func @transform_6(%arg0: i32, %arg1: i32) -> (i32, i32) {
    %c0_i32 = arith.constant 0 : i32
    %c0_i32_0 = arith.constant 0 : i32
    %c0_i32_1 = arith.constant 0 : i32
    return %c0_i32, %c0_i32_0 : i32, i32
  }
  func.func @transform_7(%arg0: i32, %arg1: i32) -> (i32, i32, i32) {
    %c0_i32 = arith.constant 0 : i32
    %c0_i32_0 = arith.constant 0 : i32
    return %arg0, %c0_i32, %arg1 : i32, i32, i32
  }
}

</mosaic_0001>

<bundles_post_ra>
// kernel: tpu_custom_call.1
= control target key start
LH: loop header
LB: loop body
LE: loop exit
PB: predicated region body
PF: predicated region fallthrough
CT: control target
= control target key end

     0   :  { %s2335_s0 = inlined_call_operand.<no memory space> [shape: f32[1], index: 0, kind: input, shape index: {}]   ;;  %s2336_s1 = inlined_call_operand.vmem [shape: f32[2,4,256], index: 1, kind: input, shape index: {}]   ;;  %s2337_s2 = inlined_call_operand.vmem [shape: f32[2,2,4,32], index: 2, kind: input, shape index: {}]   ;;  %s2338_s3 = inlined_call_operand.vmem [shape: f32[9,4,4], index: 3, kind: input, shape index: {}]   ;;  %s2339_s4 = inlined_call_operand.vmem [shape: f32[4,1], index: 4, kind: input, shape index: {}]   ;;  %s2340_s5 = inlined_call_operand.vmem [shape: f32[2,2,4,32], index: 5, kind: input, shape index: {}]   ;;  %s2341_s6 = inlined_call_operand.vmem [shape: f32[8,16], index: 6, kind: input, shape index: {}]   ;;  %s2342_s7 = inlined_call_operand.hbm [shape: f32[2,4,256], index: 7, kind: output, shape index: {}]  }
   0x1   :  { %12 = sst [smem:[#allocation3]] %s2335_s0 }
   0x2   :  { %13 = vsyncpa [#allocation5], 0 }
   0x3   :  { %15 = vsyncpa [#allocation5 + $0x1], 0  ;;  %s2055_s26 = smov 0   ;;  %s2057_s27 = smov 0  }
   0x4   :  { %s2059_s28 = smov 0   ;;  %s2061_s29 = smov 0  }
   0x5   :  { %s2063_s30 = smov 0   ;;  %s2065_s8 = smov 0  }
   0x6   :  { %s2067_s9 = smov 0   ;;  %s2069_s10 = smov 0  }
   0x7 LB: > { %s1667_s0 = sadd.s32 4294967295, %s1991_s10   ;;  %s1668_s11 = sadd.s32 4294967294, %s1991_s10   ;;  %s1991_s10 = sphi %s2069_s10, %s21_s10   ;;  %s1987_s9 = sphi %s2067_s9, %s2358_s9   ;;  %s1983_s8 = sphi %s2065_s8, %s2357_s8   ;;  %s1979_s30 = sphi %s2063_s30, %s2356_s30   ;;  %s1975_s29 = sphi %s2061_s29, %s2355_s29   ;;  %s1971_s28 = sphi %s2059_s28, %s2354_s28   ;;  %s1967_s27 = sphi %s2057_s27, %s2353_s27   ;;  %s1963_s26 = sphi %s2055_s26, %s2352_s26  }
   0x8   : > { %s30_s12 = sadd.s32 1, %s1983_s8  ;;  %s33_s13 = sadd.s32 1, %s1987_s9 }
   0x9   : > { %p31_p0 = scmp.ge.s32.totalorder %s30_s12, 2  ;;  %p220_p1 = scmp.ne.s32.totalorder %s1971_s28, %s1967_s27 }
   0xa   : > { %p221_p2 = scmp.eq.s32.totalorder %s1667_s0, 3  ;;  %p226_p5 = scmp.ne.s32.totalorder %s1967_s27, %s1963_s26 }
   0xb   : > { %s2360_s12 = smov (%p31_p0, %s30_s12), 0  ;;  %s2362_s13 = smov (!%p31_p0, %s33_s13), %s1987_s9 }
   0xc   : > { %s206_s14 = ssub.s32 %s1983_s8, %s2360_s12  ;;  %p2106_p3 = por %p221_p2, %p220_p1 }
   0xd   : > { %p35_p4 = scmp.ge.s32.totalorder %s2362_s13, 2  ;;  %p227_p6 = scmp.eq.s32.totalorder %s1668_s11, 3 }
   0xe   : > { %p1671_p7 = scmp.ge.s32.totalorder %s1991_s10, 1  ;;  %p290_p9 = scmp.lt.s32.totalorder %s1991_s10, 5 }
   0xf   : > { %s2364_s13 = smov (%p35_p4, %s2362_s13), 0  ;;  %p2115_p8 = por %p227_p6, %p226_p5 }
  0x10   : > { %2345 = sst [smem:[#allocation7_spill]] %s2364_s13  ;;  %s205_s17 = ssub.s32 %s1987_s9, %s2364_s13 }
  0x11   : > { %s210_s18 = sadd.s32 1, %s1971_s28  ;;  %s207_s19 = sor.u32 %s206_s14, %s205_s17 }
  0x12   : > { %p291_p10 = pnand %p1671_p7, %p290_p9  ;;  %p208_p11 = scmp.eq.s32.totalorder %s207_s19, 0 }
  0x13   : > { %p341_p12 = scmp.lt.s32.totalorder (!%p291_p10), %s1979_s30, 1  ;;  %p343_p13 = scmp.lt.s32.totalorder (!%p291_p10), %s1975_s29, 1  ;;  %vm370_vm0 = vcmask (!%p291_p10), 1044352   ;;  %vm374_vm1 = vcmask (!%p291_p10), 125952   ;;  %v1994_v3 = vmov (!%p291_p10), 0.0   ;;  %vm1995_vm2 = vmmov (!%p291_p10), 0  }
  0x14   : > { %s2124_s20 = scalar_select %p208_p11, %s1971_s28, %s210_s18  }
  0x15   : > { %294 = sbr.rel (%p291_p10) target bundleno = 662 (0x296), region = 48  ;;  %s1993_s13 = smov (!%p291_p10), 112   ;;  %1745 = vmatprep.subr.mxu1 (!%p291_p10), %v1994_v3  ;;  %1740 = vmatprep.subr.mxu0 (!%p291_p10), %v1994_v3  ;;  %v2002_v8 = vmov (!%p291_p10), 0   ;;  %v392_v10 = vld [vmem:[%s2339_s4] sm:$0xf] (!%p291_p10)  ;;  %v376_v13 = vlaneseq (!%p291_p10)  ;;  %vm500_vm3 = vcmask (!%p291_p10), 130048  }
  0x16   : > { %1747 = vmatprep.mubr.msk.f32.mxu1 (!%p291_p10), %vm1995_vm2, %v1994_v3  ;;  %1742 = vmatprep.mubr.msk.f32.mxu0 (!%p291_p10), %vm1995_vm2, %v1994_v3  ;;  %s2000_s0 = smov (!%p291_p10), 127   ;;  %s2001_s11 = smov (!%p291_p10), 113   ;;  %vm416_vm4 = vcmask (!%p291_p10), 1043456   ;;  %vm412_vm5 = vcmask (!%p291_p10), 31744   ;;  %v1681_v16 = vld [vmem:[%s2338_s3 + $0x4] sm:$0xf] (!%p291_p10) }
  0x17   : > { %1894 = vset.pattern.permute.xlu0 (!%p291_p10), %v2002_v8  ;;  %v377_v18 = vand.u32 (!%p291_p10), 127, %v376_v13  ;;  %vm587_vm6 = vcmask (!%p291_p10), 121856   ;;  %vm677_vm7 = vcmask (!%p291_p10), 7168   ;;  %vm407_vm8 = vcmask (!%p291_p10), 138240   ;;  %v411_v29 = vld [vmem:[%s2338_s3] sm:$0xf] (!%p291_p10) }
  0x18   : > { %vm847_vm11 = vcmask (!%p291_p10), 1039360   ;;  %v1687_v32 = vld [vmem:[%s2338_s3 + $0xc] sm:$0xf] (!%p291_p10)  ;;  %v1684_v37 = vld [vmem:[%s2338_s3 + $0x8] sm:$0xf] (!%p291_p10)  ;;  %vm937_vm12 = vcmask (!%p291_p10), 924672  }
  0x19   : > { %v382_v21 = vand.u32 (!%p291_p10), 15, %v377_v18  ;;  %v1693_v40 = vld [vmem:[%s2338_s3 + $0x14] sm:$0xf] (!%p291_p10)  ;;  %v1690_v44 = vld [vmem:[%s2338_s3 + $0x10] sm:$0xf] (!%p291_p10)  ;;  %vm1029_vm13 = vcmask (!%p291_p10), 916480  }
  0x1a   : > { %v1699_v48 = vld [vmem:[%s2338_s3 + $0x1c] sm:$0xf] (!%p291_p10)  ;;  %v1696_v50 = vld [vmem:[%s2338_s3 + $0x18] sm:$0xf] (!%p291_p10)  ;;  %v1198_v51 = vld [vmem:[%s2341_s6] sm:$0xff] (!%p291_p10)  ;;  %vm1114_vm14 = vcmask (!%p291_p10), 908288  }
  0x1b   : > { %vm2173_vm9 = vcmp.ge.s32.totalorder (!%p291_p10), %v382_v21, 1  ;;  %vm2177_vm10 = vcmp.lt.s32.totalorder (!%p291_p10), %v382_v21, 15  ;;  %vm1199_vm15 = vcmask (!%p291_p10), 64512   ;;  %v1702_v55 = vld [vmem:[%s2338_s3 + $0x20] sm:$0xf] (!%p291_p10)  ;;  %s2009_s17 = smov (!%p291_p10), 48  }
  0x1c   : > { %s342_s21 = scalar_select %p341_p12, %s1979_s30, 1 }
  0x1d   : > { %s344_s22 = scalar_select %p343_p13, %s1975_s29, 1 }
  0x1e   : > { %s1673_s23 = sshll.u32 %s342_s21, 1  ;;  %s1996_s21 = smov 16  }
  0x1f   : > { %s346_s24 = sadd.s32 %s1673_s23, %s344_s22  ;;  %s1997_s22 = smov 17  }
  0x20   : > { %s2130_s25 = sshll.u32 %s346_s24, 2  ;;  %s1998_s23 = smov 15  }
  0x21   : > { %s356_s14 = scalar_lea.vmem %s2337_s2, %s2130_s25  ;;  %s348_s19 = scalar_lea.vmem %s2336_s1, %s2130_s25 }
  0x22   : > { %v365_v0 = vld [vmem:[%s356_s14] sm:$0xf]  ;;  %s1999_s24 = smov 1   ;;  %s364_s18 = scalar_lea.vmem %s2340_s5, %s2130_s25 }
  0x23   : > { %v372_v1 = vld [vmem:[%s348_s19] sm:$0xf]  ;;  %367 = vrot.lane.b32.xlu0 %v365_v0, %s1993_s13  ;;  %s2003_s19 = smov 111   ;;  %s2006_s25 = smov 64  }
  0x24   : > { %373 = vst [vmem:[#allocation2 + $0x4] sm:$0xf] %v372_v1  ;;  %v2155_v9 = vld [vmem:[%s364_s18] sm:$0xf]  ;;  %s2008_s14 = smov 32   ;;  %s1532_s18 = sld [smem:[#allocation3]] }
  0x2b   : > { %v760_v39 = vld [vmem:[#allocation2 + $0x4] sm:$0xf] }
  0x95   : > { %v368_v2 = vpop.permute.xlu0 %367 }
  0x96   : > { %371 = vst.msk [vmem:[#allocation2] sm:$0xf] %vm370_vm0, %v368_v2  ;;  %vm1521_vm0 = vcmask 261120  }
  0x97   : > { %375 = vst.msk [vmem:[#allocation2 + $0x8] sm:$0xf] %vm374_vm1, %v368_v2  ;;  %vm1523_vm1 = vcmask 392192  }
  0x9d   : > { %v491_v4 = vld [vmem:[#allocation2] sm:$0xff] }
  0x9e   : > { %496 = vrot.lane.b32.xlu1 %v491_v4, %s1996_s21  ;;  %403 = vrot.lane.b32.xlu0 %v491_v4, %s1997_s22  ;;  %v495_v5 = vcombine.high %v491_v4, %v491_v4  ;;  %v840_v6 = vld [vmem:[#allocation2 + $0x4] sm:$0xff] }
  0x9f   : > { %v842_v7 = vcombine.high %v840_v6, %v840_v6 }
  0xa2   : > { %583 = vrot.lane.b32.xlu1 %v491_v4, %s1998_s23  ;;  %498 = vrot.lane.b32.xlu0 %v495_v5, %s1996_s21 }
  0xa6   : > { %673 = vrot.lane.b32.xlu1 %v491_v4, %s1999_s24  ;;  %585 = vrot.lane.b32.xlu0 %v495_v5, %s1998_s23  ;;  %s1710_s23 = sshll.u32 %s1979_s30, 1 }
  0xaa   : > { %675 = vrot.lane.b32.xlu0 %v495_v5, %s1999_s24  ;;  %405 = vrot.lane.b32.xlu1 %v495_v5, %s1997_s22  ;;  %s2004_s22 = smov 120  }
  0xae   : > { %845 = vrot.lane.b32.xlu0 %v842_v7, %s2000_s0  ;;  %843 = vrot.lane.b32.xlu1 %v840_v6, %s2000_s0  ;;  %s2005_s0 = smov 104  }
  0xb2   : > { %935 = vrot.lane.b32.xlu0 %v842_v7, %s2001_s11  ;;  %933 = vrot.lane.b32.xlu1 %v840_v6, %s2001_s11  ;;  %s2007_s11 = smov 80  }
  0xb6   : > { %1027 = vrot.lane.b32.xlu0 %v842_v7, %s1993_s13  ;;  %1025 = vrot.lane.b32.xlu1 %v840_v6, %s1993_s13 }
  0xba   : > { %1112 = vrot.lane.b32.xlu0 %v842_v7, %s2003_s19  ;;  %1110 = vrot.lane.b32.xlu1 %v840_v6, %s2003_s19  ;;  %s338_s19 = sand.u32 1, %s1967_s27  }
  0xbe   : > { %1347 = vrot.lane.b32.xlu0 %v2155_v9, %s1993_s13  ;;  %1273 = vrot.lane.b32.xlu1 %v2155_v9, %s2004_s22  ;;  %s1672_s22 = sshll.u32 %s338_s19, 2 }
  0xc2   : > { %1421 = vrot.lane.b32.xlu1 %v2155_v9, %s2005_s0  ;;  %395 = vperm.xlu0 %1894, %v392_v10   ;;  %s340_s0 = scalar_lea.vmem [#allocation4], %s1672_s22 }
 0x110   : > { %v497_v11 = vpop.permute.xlu1 %496  ;;  %v404_v12 = vpop.permute.xlu0 %403 }
 0x114   : > { %v584_v14 = vpop.permute.xlu1 %583  ;;  %v499_v15 = vpop.permute.xlu0 %498 }
 0x115   : > { %v501_v17 = vsel %vm500_vm3, %v497_v11, %v499_v15 }
 0x116   : > { %1746 = vmatpush3.msk.msra.mxu1 %vm416_vm4, %v501_v17 }
 0x117   : > { %1755 = vmatprep.subr.mxu1 %v1994_v3  ;;  %1748 = vmatmul.mubr.msk.f32.vlgmr.msra.gmra.mrb[0].mxu1 %vm412_vm5, %v1681_v16 }
 0x118   : > { %v674_v19 = vpop.permute.xlu1 %673  ;;  %v586_v20 = vpop.permute.xlu0 %585  ;;  %1757 = vmatprep.mubr.msk.f32.mxu1 %vm1995_vm2, %v1994_v3 }
 0x119   : > { %v588_v26 = vsel %vm587_vm6, %v584_v14, %v586_v20 }
 0x11a   : > { %v590_v33 = vsel %vm2177_vm10, %v588_v26, 0.0 }
 0x11c   : > { %v676_v23 = vpop.permute.xlu0 %675  ;;  %v406_v24 = vpop.permute.xlu1 %405 }
 0x11d   : > { %v678_v27 = vsel %vm677_vm7, %v674_v19, %v676_v23  ;;  %v408_v28 = vsel %vm407_vm8, %v404_v12, %v406_v24 }
 0x11e   : > { %v680_v30 = vsel %vm2173_vm9, %v678_v27, 0.0  ;;  %v410_v31 = vsel %vm2173_vm9, %v408_v28, 0.0 }
 0x11f   : > { %1741 = vmatpush3.msk.msra.mxu0 %vm416_vm4, %v410_v31  ;;  %1756 = vmatpush3.msk.msra.mxu1 %vm416_vm4, %v680_v30 }
 0x120   : > { %v846_v34 = vpop.permute.xlu0 %845  ;;  %1743 = vmatmul.mubr.msk.f32.vlgmr.msra.gmra.mrb[0].mxu0 %vm412_vm5, %v411_v29  ;;  %1750 = vmatprep.subr.mxu0 %v1994_v3  ;;  %v844_v35 = vpop.permute.xlu1 %843 }
 0x121   : > { %v848_v36 = vsel %vm847_vm11, %v844_v35, %v846_v34  ;;  %1751 = vmatpush3.msk.msra.mxu0 %vm416_vm4, %v590_v33  ;;  %1765 = vmatprep.subr.mxu1 %v1994_v3 }
 0x122   : > { %v850_v38 = vsel %vm2177_vm10, %v848_v36, 0.0  ;;  %1752 = vmatprep.mubr.msk.f32.mxu0 %vm1995_vm2, %v1994_v3  ;;  %1758 = vmatmul.mubr.msk.f32.vlgmr.msra.gmra.mrb[2].mxu1 %vm412_vm5, %v1687_v32 }
 0x123   : > { %1766 = vmatpush3.msk.msra.mxu1 %vm416_vm4, %v850_v38  ;;  %1760 = vmatprep.subr.mxu0 %v1994_v3 }
 0x124   : > { %v936_v41 = vpop.permute.xlu0 %935  ;;  %1753 = vmatmul.mubr.msk.f32.vlgmr.msra.gmra.mrb[2].mxu0 %vm412_vm5, %v1684_v37  ;;  %v934_v42 = vpop.permute.xlu1 %933  ;;  %1767 = vmatprep.mubr.msk.f32.mxu1 %vm1995_vm2, %v1994_v3 }
 0x125   : > { %v938_v43 = vsel %vm937_vm12, %v934_v42, %v936_v41  ;;  %1761 = vmatpush3.msk.msra.mxu0 %vm416_vm4, %v760_v39  ;;  %1762 = vmatprep.mubr.msk.f32.mxu0 %vm1995_vm2, %v1994_v3 }
 0x126   : > { %v940_v45 = vsel %vm2173_vm9, %v938_v43, 0.0  ;;  %1768 = vmatmul.mubr.msk.f32.vlgmr.msra.gmra.mrb[4].mxu1 %vm412_vm5, %v1693_v40  ;;  %1770 = vmatprep.subr.mxu0 %v1994_v3  ;;  %v1533_v43 = vstv %s1532_s18 }
 0x127   : > { %1775 = vmatprep.subr.mxu1 %v1994_v3  ;;  %1777 = vmatprep.mubr.msk.f32.mxu1 %vm1995_vm2, %v1994_v3 }
 0x128   : > { %v1028_v46 = vpop.permute.xlu0 %1027  ;;  %1763 = vmatmul.mubr.msk.f32.vlgmr.msra.gmra.mrb[4].mxu0 %vm412_vm5, %v1690_v44  ;;  %v1026_v47 = vpop.permute.xlu1 %1025 }
 0x129   : > { %1771 = vmatpush3.msk.msra.mxu0 %vm416_vm4, %v940_v45  ;;  %v1030_v49 = vsel %vm1029_vm13, %v1026_v47, %v1028_v46  ;;  %1772 = vmatprep.mubr.msk.f32.mxu0 %vm1995_vm2, %v1994_v3 }
 0x12a   : > { %1776 = vmatpush3.msk.msra.mxu1 %vm416_vm4, %v1030_v49  ;;  %1780 = vmatprep.subr.mxu0 %v1994_v3 }
 0x12b   : > { %1778 = vmatmul.mubr.msk.f32.vlgmr.msra.gmra.mrb[6].mxu1 %vm412_vm5, %v1699_v48  ;;  %1785 = vmatprep.subr.mxu1 %v1994_v3 }
 0x12c   : > { %v1113_v52 = vpop.permute.xlu0 %1112  ;;  %1773 = vmatmul.mubr.msk.f32.vlgmr.msra.gmra.mrb[6].mxu0 %vm412_vm5, %v1696_v50  ;;  %v1111_v53 = vpop.permute.xlu1 %1110  ;;  %1786 = vmatpush3.msra.mxu1 %v1198_v51 }
 0x12d   : > { %v1115_v54 = vsel %vm1114_vm14, %v1111_v53, %v1113_v52  ;;  %1787 = vmatprep.mubr.msk.f32.mxu1 %vm1995_vm2, %v1994_v3  ;;  %1782 = vmatprep.mubr.msk.f32.mxu0 %vm1995_vm2, %v1994_v3 }
 0x12e   : > { %v1117_v56 = vsel %vm2177_vm10, %v1115_v54, 0.0  ;;  %1795 = vmatprep.subr.mxu1 %v1994_v3 }
 0x12f   : > { %1781 = vmatpush3.msk.msra.mxu0 %vm416_vm4, %v1117_v56  ;;  %1788 = vmatmul.mubr.msk.f32.vlgmr.msra.gmra.mrb[8].mxu1 %vm1199_vm15, %v2155_v9  ;;  %vm1527_vm4 = vcmask 654336  }
 0x130   : > { %1783 = vmatmul.mubr.msk.f32.vlgmr.msra.gmra.mrb[8].mxu0 %vm412_vm5, %v1702_v55  ;;  %v1348_v57 = vpop.permute.xlu0 %1347  ;;  %1796 = vmatpush3.msra.mxu1 %v1198_v51  ;;  %v1274_v58 = vpop.permute.xlu1 %1273  ;;  %vm1529_vm5 = vcmask 785408  }
 0x131   : > { %1797 = vmatprep.mubr.msk.f32.mxu1 %vm1995_vm2, %v1994_v3  ;;  %1790 = vmatprep.subr.mxu0 %v1994_v3 }
 0x132   : > { %1791 = vmatpush3.msra.mxu0 %v1198_v51  ;;  %1792 = vmatprep.mubr.msk.f32.mxu0 %vm1995_vm2, %v1994_v3 }
 0x133   : > { %1798 = vmatmul.mubr.msk.f32.vlgmr.msra.gmra.mrb[10].mxu1 %vm1199_vm15, %v1348_v57  ;;  %1800 = vmatprep.subr.mxu0 %v1994_v3 }
 0x134   : > { %1793 = vmatmul.mubr.msk.f32.vlgmr.msra.gmra.mrb[10].mxu0 %vm1199_vm15, %v1274_v58  ;;  %v1422_v59 = vpop.permute.xlu1 %1421 }
 0x135   : > { %1801 = vmatpush3.msra.mxu0 %v1198_v51  ;;  %1802 = vmatprep.mubr.msk.f32.mxu0 %vm1995_vm2, %v1994_v3  ;;  %vm1525_vm2 = vcmask 523264  }
 0x138   : > { %1803 = vmatmul.mubr.msk.f32.vlgmr.msra.gmra.mrb[12].mxu0 %vm1199_vm15, %v1422_v59 }
 0x141   : > { %v396_v62 = vpop.permute.xlu0 %395 }
 0x1ea   : > { %v573_v60 = vpop.f32.mrb[0].mxu1 }
 0x1eb   : > { %v1749_v61 = vpop.f32.mrb[1].mxu1 }
 0x1f3   : > { %v486_v63 = vpop.f32.mrb[0].mxu0 }
 0x1f4   : > { %v490_v0 = vadd.f32 %v486_v63, %v396_v62  ;;  %v1744_v1 = vpop.f32.mrb[1].mxu0 }
 0x1f5   : > { %v755_v2 = vpop.f32.mrb[2].mxu1 }
 0x1f6   : > { %v577_v4 = vadd.f32 %v573_v60, %v490_v0  ;;  %v1759_v5 = vpop.f32.mrb[3].mxu1 }
 0x1f7   : > { %v665_v6 = vpop.f32.mrb[2].mxu0 }
 0x1f8   : > { %v669_v7 = vadd.f32 %v665_v6, %v577_v4  ;;  %v1754_v8 = vpop.f32.mrb[3].mxu0 }
 0x1f9   : > { %v925_v9 = vpop.f32.mrb[4].mxu1 }
 0x1fa   : > { %v759_v10 = vadd.f32 %v755_v2, %v669_v7  ;;  %v1769_v11 = vpop.f32.mrb[5].mxu1 }
 0x1fb   : > { %v835_v12 = vpop.f32.mrb[4].mxu0 }
 0x1fc   : > { %v839_v3 = vadd.f32 %v835_v12, %v759_v10  ;;  %v1764_v13 = vpop.f32.mrb[5].mxu0 }
 0x1fe   : > { %v929_v14 = vadd.f32 %v925_v9, %v839_v3  ;;  %v1102_v15 = vpop.f32.mrb[6].mxu1 }
 0x1ff   : > { %v1015_v16 = vpop.f32.mrb[6].mxu0  ;;  %v1779_v17 = vpop.f32.mrb[7].mxu1 }
 0x200   : > { %v1019_v18 = vadd.f32 %v1015_v16, %v929_v14  ;;  %v1774_v19 = vpop.f32.mrb[7].mxu0 }
 0x202   : > { %v1106_v20 = vadd.f32 %v1102_v15, %v1019_v18  ;;  %v1269_v21 = vpop.f32.mrb[8].mxu1 }
 0x203   : > { %1496 = vrot.lane.b32.xlu1 %v1269_v21, %s1996_s21  ;;  %v1192_v22 = vpop.f32.mrb[8].mxu0  ;;  %v1789_v23 = vpop.f32.mrb[9].mxu1  ;;  %s2010_s21 = smov 96  }
 0x204   : > { %v1196_v24 = vadd.f32 %v1192_v22, %v1106_v20  ;;  %v1784_v25 = vpop.f32.mrb[9].mxu0 }
 0x206   : > { %v1417_v26 = vpop.f32.mrb[10].mxu1 }
 0x207   : > { %1507 = vrot.lane.b32.xlu1 %v1417_v26, %s2006_s25  ;;  %1510 = vrot.lane.b32.xlu0 %v1417_v26, %s2007_s11  ;;  %v1799_v27 = vpop.f32.mrb[11].mxu1  ;;  %v1343_v28 = vpop.f32.mrb[10].mxu0  ;;  %s1553_s25 = sshll.u32 %s340_s0, 4  ;;  %s2284_s25 = int_to_ptr.vmem [resolvable:$true] %s1553_s25 }
 0x208   : > { %v1794_v29 = vpop.f32.mrb[11].mxu0 }
 0x20b   : > { %1500 = vrot.lane.b32.xlu1 %v1343_v28, %s2008_s14  ;;  %1503 = vrot.lane.b32.xlu0 %v1343_v28, %s2009_s17  ;;  %v1491_v30 = vpop.f32.mrb[12].mxu0  ;;  %s1897_s17 = scalar_lea.vmem %s2284_s25, 64 }
 0x20c   : > { %v1804_v31 = vpop.f32.mrb[13].mxu0  ;;  %p1898_p0 = scmp.ne.s32.totalorder %s2284_s25, %s1897_s17 }
 0x20e   : > { %p1899_p1 = pnand %p1898_p0, %p2106_p3 }
 0x20f   : > { %1514 = vrot.lane.b32.xlu1 %v1491_v30, %s2010_s21  ;;  %1517 = vrot.lane.b32.xlu0 %v1491_v30, %s1993_s13  ;;  %s1549_s13 = sadd.s32 %s1975_s29, %s1710_s23  ;;  %s1538_s29 = scalar_lea.sflag [#allocation5], %s338_s19 }
 0x210   : > { %s1711_s24 = sshll.u32 %s1549_s13, 6  ;;  %p1900_p2 = pneg %p1899_p1 }
 0x211   : > { %s2282_s14 = scalar_lea.hbm %s2342_s7, %s1711_s24  ;;  %s2011_s21 = smov [#allocation4]  }
 0x212   : > { %s1901_s18 = sshll.u32 %s2011_s21, 4  ;;  %s1902_s18 = int_to_ptr.vmem [resolvable:$false] %s1901_s18 }
 0x213   : > { %s1903_s22 = scalar_lea.vmem %s1902_s18, 128  ;;  %p1904_p4 = scmp.lt.s32.totalorder %s2284_s25, %s1902_s18 }
 0x214   : > { %p1905_p5 = scmp.lt.s32.totalorder %s1903_s22, %s1897_s17 }
 0x216   : > { %p1906_p6 = por %p1905_p5, %p1904_p4 }
 0x218   : > { %p1907_p7 = pnand %p1906_p6, %p1900_p2 }
 0x275   : > { %v1497_v32 = vpop.permute.xlu1 %1496 }
 0x276   : > { %v1520_v35 = vsel %vm500_vm3, %v1269_v21, %v1497_v32 }
 0x279   : > { %v1508_v33 = vpop.permute.xlu1 %1507  ;;  %v1511_v34 = vpop.permute.xlu0 %1510 }
 0x27d   : > { %v1501_v36 = vpop.permute.xlu1 %1500  ;;  %v1504_v37 = vpop.permute.xlu0 %1503 }
 0x27e   : > { %v1522_v38 = vsel %vm1521_vm0, %v1520_v35, %v1501_v36 }
 0x27f   : > { %v1524_v39 = vsel %vm1523_vm1, %v1522_v38, %v1504_v37 }
 0x280   : > { %v1526_v40 = vsel %vm1525_vm2, %v1524_v39, %v1508_v33 }
 0x281   : > { %v1528_v41 = vsel %vm1527_vm4, %v1526_v40, %v1511_v34  ;;  %v1515_v42 = vpop.permute.xlu1 %1514  ;;  %v1518_v44 = vpop.permute.xlu0 %1517 }
 0x282   : > { %v1530_v45 = vsel %vm1529_vm5, %v1528_v41, %v1515_v42 }
 0x283   : > { %v1531_v46 = vsel %vm1029_vm13, %v1530_v45, %v1518_v44 }
 0x284   : > { %v1534_v47 = vmul.f32 %v1533_v43, %v1531_v46 }
 0x286   : > { %v1535_v48 = vadd.f32 %v1534_v47, %v1196_v24 }
 0x288   : > { %1536 = vst [vmem:[%s340_s0] sm:$0xf] %v1535_v48 }
 0x289   : > { %1910 = shalt.err (!%p1907_p7)
}
 0x28a   : > { %s1911_s19 = scalar_lea.hbm %s2282_s14, 64  ;;  %s1915_s24 = scalar_lea.hbm %s2342_s7, 256 }
 0x28b   : > { %p1912_p9 = scmp.ne.s32.totalorder %s2282_s14, %s1911_s19  ;;  %p1916_p12 = scmp.lt.u32.totalorder %s2282_s14, %s2342_s7 }
 0x28c   : > { %p1917_p13 = scmp.lt.u32.totalorder %s1915_s24, %s1911_s19  ;;  %p1919_p1 = scmp.lt.u32.totalorder %s1911_s19, %s2282_s14 }
 0x28d   : > { %p1913_p10 = pnand %p1912_p9, %p2106_p3 }
 0x28e   : > { %p1918_p0 = por %p1917_p13, %p1916_p12 }
 0x28f   : > { %p1914_p11 = pneg %p1913_p10 }
 0x290   : > { %p1920_p2 = por %p1919_p1, %p1918_p0 }
 0x292   : > { %p1921_p4 = pnand %p1920_p2, %p1914_p11 }
 0x294   : > { %1924 = shalt.err (!%p1921_p4)
}
 0x295   : > { %1805 = dma.vmem_to_hbm [thread:$0]  (%p2106_p3), %s2284_s25, 64, %s2282_s14, %s1538_s29  }
 0x296 PF: > { %p1811_p5 = scmp.ge.s32.totalorder %s1991_s10, 2  ;;  %s1565_s11 = sand.u32 1, %s1963_s26  }
 0x297   : > { %s1566_s17 = scalar_lea.sflag [#allocation5], %s1565_s11 }
 0x298   : > { %p1808_p6 = pnand %p1811_p5, %p2115_p8 }
 0x29a   : > { %1958 = dma.done.wait (!%p1808_p6), %s1566_s17, 64  }
 0x29b   : > { %1960 = vsyncadd (!%p1808_p6), %s1566_s17, 4294967232  ;;  %s21_s10 = sadd.s32 1, %s1991_s10   ;;  %s2351_s15 = sld [smem:[#allocation7_spill]] }
 0x29c   : > { %p18_p7 = scmp.ge.s32.totalorder %s21_s10, 6   ;;  %s2352_s26 = smov %s1967_s27 }
 0x29d   : > { %s2353_s27 = smov %s1971_s28  ;;  %s2354_s28 = smov %s2124_s20 }
 0x29e   : > { %s2355_s29 = smov %s1983_s8  ;;  %s2356_s30 = smov %s1987_s9 }
 0x29f   : > { %s2357_s8 = smov %s2360_s12  ;;  %20 = sbr.rel (!%p18_p7) target bundleno = 7 (0x7), region = 97 }
 0x2a1   : > { %s2358_s9 = smov %s2351_s15 }
 0x2a6   :  { %1571 = vsyncpa [#allocation5], 1 }
 0x2a7   :  { %1573 = vsyncpa [#allocation5 + $0x1], 1 }

// kernel: tpu_custom_call.1
= control target key start
LH: loop header
LB: loop body
LE: loop exit
PB: predicated region body
PF: predicated region fallthrough
CT: control target
= control target key end

     0   :  { %s2335_s0 = inlined_call_operand.<no memory space> [shape: f32[1], index: 0, kind: input, shape index: {}]   ;;  %s2336_s1 = inlined_call_operand.vmem [shape: f32[2,4,256], index: 1, kind: input, shape index: {}]   ;;  %s2337_s2 = inlined_call_operand.vmem [shape: f32[2,2,4,32], index: 2, kind: input, shape index: {}]   ;;  %s2338_s3 = inlined_call_operand.vmem [shape: f32[9,4,4], index: 3, kind: input, shape index: {}]   ;;  %s2339_s4 = inlined_call_operand.vmem [shape: f32[4,1], index: 4, kind: input, shape index: {}]   ;;  %s2340_s5 = inlined_call_operand.vmem [shape: f32[2,2,4,32], index: 5, kind: input, shape index: {}]   ;;  %s2341_s6 = inlined_call_operand.vmem [shape: f32[8,16], index: 6, kind: input, shape index: {}]   ;;  %s2342_s7 = inlined_call_operand.hbm [shape: f32[2,4,256], index: 7, kind: output, shape index: {}]  }
   0x1   :  { %12 = sst [smem:[#allocation3]] %s2335_s0 }
   0x2   :  { %13 = vsyncpa [#allocation5], 0 }
   0x3   :  { %15 = vsyncpa [#allocation5 + $0x1], 0  ;;  %s2055_s26 = smov 0   ;;  %s2057_s27 = smov 0  }
   0x4   :  { %s2059_s28 = smov 0   ;;  %s2061_s29 = smov 0  }
   0x5   :  { %s2063_s30 = smov 0   ;;  %s2065_s8 = smov 0  }
   0x6   :  { %s2067_s9 = smov 0   ;;  %s2069_s10 = smov 0  }
   0x7 LB: > { %s1667_s0 = sadd.s32 4294967295, %s1991_s10   ;;  %s1668_s11 = sadd.s32 4294967294, %s1991_s10   ;;  %s1991_s10 = sphi %s2069_s10, %s21_s10   ;;  %s1987_s9 = sphi %s2067_s9, %s2358_s9   ;;  %s1983_s8 = sphi %s2065_s8, %s2357_s8   ;;  %s1979_s30 = sphi %s2063_s30, %s2356_s30   ;;  %s1975_s29 = sphi %s2061_s29, %s2355_s29   ;;  %s1971_s28 = sphi %s2059_s28, %s2354_s28   ;;  %s1967_s27 = sphi %s2057_s27, %s2353_s27   ;;  %s1963_s26 = sphi %s2055_s26, %s2352_s26  }
   0x8   : > { %s30_s12 = sadd.s32 1, %s1983_s8  ;;  %s33_s13 = sadd.s32 1, %s1987_s9 }
   0x9   : > { %p31_p0 = scmp.ge.s32.totalorder %s30_s12, 2  ;;  %p220_p1 = scmp.ne.s32.totalorder %s1971_s28, %s1967_s27 }
   0xa   : > { %p221_p2 = scmp.eq.s32.totalorder %s1667_s0, 3  ;;  %p226_p5 = scmp.ne.s32.totalorder %s1967_s27, %s1963_s26 }
   0xb   : > { %s2360_s12 = smov (%p31_p0, %s30_s12), 0  ;;  %s2362_s13 = smov (!%p31_p0, %s33_s13), %s1987_s9 }
   0xc   : > { %s206_s14 = ssub.s32 %s1983_s8, %s2360_s12  ;;  %p2106_p3 = por %p221_p2, %p220_p1 }
   0xd   : > { %p35_p4 = scmp.ge.s32.totalorder %s2362_s13, 2  ;;  %p227_p6 = scmp.eq.s32.totalorder %s1668_s11, 3 }
   0xe   : > { %p1671_p7 = scmp.ge.s32.totalorder %s1991_s10, 1  ;;  %p290_p9 = scmp.lt.s32.totalorder %s1991_s10, 5 }
   0xf   : > { %s2364_s13 = smov (%p35_p4, %s2362_s13), 0  ;;  %p2115_p8 = por %p227_p6, %p226_p5 }
  0x10   : > { %2345 = sst [smem:[#allocation7_spill]] %s2364_s13  ;;  %s205_s17 = ssub.s32 %s1987_s9, %s2364_s13 }
  0x11   : > { %s210_s18 = sadd.s32 1, %s1971_s28  ;;  %s207_s19 = sor.u32 %s206_s14, %s205_s17 }
  0x12   : > { %p291_p10 = pnand %p1671_p7, %p290_p9  ;;  %p208_p11 = scmp.eq.s32.totalorder %s207_s19, 0 }
  0x13   : > { %p341_p12 = scmp.lt.s32.totalorder (!%p291_p10), %s1979_s30, 1  ;;  %p343_p13 = scmp.lt.s32.totalorder (!%p291_p10), %s1975_s29, 1  ;;  %vm370_vm0 = vcmask (!%p291_p10), 1044352   ;;  %vm374_vm1 = vcmask (!%p291_p10), 125952   ;;  %v1994_v3 = vmov (!%p291_p10), 0.0   ;;  %vm1995_vm2 = vmmov (!%p291_p10), 0  }
  0x14   : > { %s2124_s20 = scalar_select %p208_p11, %s1971_s28, %s210_s18  }
  0x15   : > { %294 = sbr.rel (%p291_p10) target bundleno = 662 (0x296), region = 48  ;;  %s1993_s13 = smov (!%p291_p10), 112   ;;  %1745 = vmatprep.subr.mxu1 (!%p291_p10), %v1994_v3  ;;  %1740 = vmatprep.subr.mxu0 (!%p291_p10), %v1994_v3  ;;  %v2002_v8 = vmov (!%p291_p10), 0   ;;  %v392_v10 = vld [vmem:[%s2339_s4] sm:$0xf] (!%p291_p10)  ;;  %v376_v13 = vlaneseq (!%p291_p10)  ;;  %vm500_vm3 = vcmask (!%p291_p10), 130048  }
  0x16   : > { %1747 = vmatprep.mubr.msk.f32.mxu1 (!%p291_p10), %vm1995_vm2, %v1994_v3  ;;  %1742 = vmatprep.mubr.msk.f32.mxu0 (!%p291_p10), %vm1995_vm2, %v1994_v3  ;;  %s2000_s0 = smov (!%p291_p10), 127   ;;  %s2001_s11 = smov (!%p291_p10), 113   ;;  %vm416_vm4 = vcmask (!%p291_p10), 1043456   ;;  %vm412_vm5 = vcmask (!%p291_p10), 31744   ;;  %v1681_v16 = vld [vmem:[%s2338_s3 + $0x4] sm:$0xf] (!%p291_p10) }
  0x17   : > { %1894 = vset.pattern.permute.xlu0 (!%p291_p10), %v2002_v8  ;;  %v377_v18 = vand.u32 (!%p291_p10), 127, %v376_v13  ;;  %vm587_vm6 = vcmask (!%p291_p10), 121856   ;;  %vm677_vm7 = vcmask (!%p291_p10), 7168   ;;  %vm407_vm8 = vcmask (!%p291_p10), 138240   ;;  %v411_v29 = vld [vmem:[%s2338_s3] sm:$0xf] (!%p291_p10) }
  0x18   : > { %vm847_vm11 = vcmask (!%p291_p10), 1039360   ;;  %v1687_v32 = vld [vmem:[%s2338_s3 + $0xc] sm:$0xf] (!%p291_p10)  ;;  %v1684_v37 = vld [vmem:[%s2338_s3 + $0x8] sm:$0xf] (!%p291_p10)  ;;  %vm937_vm12 = vcmask (!%p291_p10), 924672  }
  0x19   : > { %v382_v21 = vand.u32 (!%p291_p10), 15, %v377_v18  ;;  %v1693_v40 = vld [vmem:[%s2338_s3 + $0x14] sm:$0xf] (!%p291_p10)  ;;  %v1690_v44 = vld [vmem:[%s2338_s3 + $0x10] sm:$0xf] (!%p291_p10)  ;;  %vm1029_vm13 = vcmask (!%p291_p10), 916480  }
  0x1a   : > { %v1699_v48 = vld [vmem:[%s2338_s3 + $0x1c] sm:$0xf] (!%p291_p10)  ;;  %v1696_v50 = vld [vmem:[%s2338_s3 + $0x18] sm:$0xf] (!%p291_p10)  ;;  %v1198_v51 = vld [vmem:[%s2341_s6] sm:$0xff] (!%p291_p10)  ;;  %vm1114_vm14 = vcmask (!%p291_p10), 908288  }
  0x1b   : > { %vm2173_vm9 = vcmp.ge.s32.totalorder (!%p291_p10), %v382_v21, 1  ;;  %vm2177_vm10 = vcmp.lt.s32.totalorder (!%p291_p10), %v382_v21, 15  ;;  %vm1199_vm15 = vcmask (!%p291_p10), 64512   ;;  %v1702_v55 = vld [vmem:[%s2338_s3 + $0x20] sm:$0xf] (!%p291_p10)  ;;  %s2009_s17 = smov (!%p291_p10), 48  }
  0x1c   : > { %s342_s21 = scalar_select %p341_p12, %s1979_s30, 1 }
  0x1d   : > { %s344_s22 = scalar_select %p343_p13, %s1975_s29, 1 }
  0x1e   : > { %s1673_s23 = sshll.u32 %s342_s21, 1  ;;  %s1996_s21 = smov 16  }
  0x1f   : > { %s346_s24 = sadd.s32 %s1673_s23, %s344_s22  ;;  %s1997_s22 = smov 17  }
  0x20   : > { %s2130_s25 = sshll.u32 %s346_s24, 2  ;;  %s1998_s23 = smov 15  }
  0x21   : > { %s356_s14 = scalar_lea.vmem %s2337_s2, %s2130_s25  ;;  %s348_s19 = scalar_lea.vmem %s2336_s1, %s2130_s25 }
  0x22   : > { %v365_v0 = vld [vmem:[%s356_s14] sm:$0xf]  ;;  %s1999_s24 = smov 1   ;;  %s364_s18 = scalar_lea.vmem %s2340_s5, %s2130_s25 }
  0x23   : > { %v372_v1 = vld [vmem:[%s348_s19] sm:$0xf]  ;;  %367 = vrot.lane.b32.xlu0 %v365_v0, %s1993_s13  ;;  %s2003_s19 = smov 111   ;;  %s2006_s25 = smov 64  }
  0x24   : > { %373 = vst [vmem:[#allocation2 + $0x4] sm:$0xf] %v372_v1  ;;  %v2155_v9 = vld [vmem:[%s364_s18] sm:$0xf]  ;;  %s2008_s14 = smov 32   ;;  %s1532_s18 = sld [smem:[#allocation3]] }
  0x2b   : > { %v760_v39 = vld [vmem:[#allocation2 + $0x4] sm:$0xf] }
  0x95   : > { %v368_v2 = vpop.permute.xlu0 %367 }
  0x96   : > { %371 = vst.msk [vmem:[#allocation2] sm:$0xf] %vm370_vm0, %v368_v2  ;;  %vm1521_vm0 = vcmask 261120  }
  0x97   : > { %375 = vst.msk [vmem:[#allocation2 + $0x8] sm:$0xf] %vm374_vm1, %v368_v2  ;;  %vm1523_vm1 = vcmask 392192  }
  0x9d   : > { %v491_v4 = vld [vmem:[#allocation2] sm:$0xff] }
  0x9e   : > { %496 = vrot.lane.b32.xlu1 %v491_v4, %s1996_s21  ;;  %403 = vrot.lane.b32.xlu0 %v491_v4, %s1997_s22  ;;  %v495_v5 = vcombine.high %v491_v4, %v491_v4  ;;  %v840_v6 = vld [vmem:[#allocation2 + $0x4] sm:$0xff] }
  0x9f   : > { %v842_v7 = vcombine.high %v840_v6, %v840_v6 }
  0xa2   : > { %583 = vrot.lane.b32.xlu1 %v491_v4, %s1998_s23  ;;  %498 = vrot.lane.b32.xlu0 %v495_v5, %s1996_s21 }
  0xa6   : > { %673 = vrot.lane.b32.xlu1 %v491_v4, %s1999_s24  ;;  %585 = vrot.lane.b32.xlu0 %v495_v5, %s1998_s23  ;;  %s1710_s23 = sshll.u32 %s1979_s30, 1 }
  0xaa   : > { %675 = vrot.lane.b32.xlu0 %v495_v5, %s1999_s24  ;;  %405 = vrot.lane.b32.xlu1 %v495_v5, %s1997_s22  ;;  %s2004_s22 = smov 120  }
  0xae   : > { %845 = vrot.lane.b32.xlu0 %v842_v7, %s2000_s0  ;;  %843 = vrot.lane.b32.xlu1 %v840_v6, %s2000_s0  ;;  %s2005_s0 = smov 104  }
  0xb2   : > { %935 = vrot.lane.b32.xlu0 %v842_v7, %s2001_s11  ;;  %933 = vrot.lane.b32.xlu1 %v840_v6, %s2001_s11  ;;  %s2007_s11 = smov 80  }
  0xb6   : > { %1027 = vrot.lane.b32.xlu0 %v842_v7, %s1993_s13  ;;  %1025 = vrot.lane.b32.xlu1 %v840_v6, %s1993_s13 }
  0xba   : > { %1112 = vrot.lane.b32.xlu0 %v842_v7, %s2003_s19  ;;  %1110 = vrot.lane.b32.xlu1 %v840_v6, %s2003_s19  ;;  %s338_s19 = sand.u32 1, %s1967_s27  }
  0xbe   : > { %1347 = vrot.lane.b32.xlu0 %v2155_v9, %s1993_s13  ;;  %1273 = vrot.lane.b32.xlu1 %v2155_v9, %s2004_s22  ;;  %s1672_s22 = sshll.u32 %s338_s19, 2 }
  0xc2   : > { %1421 = vrot.lane.b32.xlu1 %v2155_v9, %s2005_s0  ;;  %395 = vperm.xlu0 %1894, %v392_v10   ;;  %s340_s0 = scalar_lea.vmem [#allocation4], %s1672_s22 }
 0x110   : > { %v497_v11 = vpop.permute.xlu1 %496  ;;  %v404_v12 = vpop.permute.xlu0 %403 }
 0x114   : > { %v584_v14 = vpop.permute.xlu1 %583  ;;  %v499_v15 = vpop.permute.xlu0 %498 }
 0x115   : > { %v501_v17 = vsel %vm500_vm3, %v497_v11, %v499_v15 }
 0x116   : > { %1746 = vmatpush3.msk.msra.mxu1 %vm416_vm4, %v501_v17 }
 0x117   : > { %1755 = vmatprep.subr.mxu1 %v1994_v3  ;;  %1748 = vmatmul.mubr.msk.f32.vlgmr.msra.gmra.mrb[0].mxu1 %vm412_vm5, %v1681_v16 }
 0x118   : > { %v674_v19 = vpop.permute.xlu1 %673  ;;  %v586_v20 = vpop.permute.xlu0 %585  ;;  %1757 = vmatprep.mubr.msk.f32.mxu1 %vm1995_vm2, %v1994_v3 }
 0x119   : > { %v588_v26 = vsel %vm587_vm6, %v584_v14, %v586_v20 }
 0x11a   : > { %v590_v33 = vsel %vm2177_vm10, %v588_v26, 0.0 }
 0x11c   : > { %v676_v23 = vpop.permute.xlu0 %675  ;;  %v406_v24 = vpop.permute.xlu1 %405 }
 0x11d   : > { %v678_v27 = vsel %vm677_vm7, %v674_v19, %v676_v23  ;;  %v408_v28 = vsel %vm407_vm8, %v404_v12, %v406_v24 }
 0x11e   : > { %v680_v30 = vsel %vm2173_vm9, %v678_v27, 0.0  ;;  %v410_v31 = vsel %vm2173_vm9, %v408_v28, 0.0 }
 0x11f   : > { %1741 = vmatpush3.msk.msra.mxu0 %vm416_vm4, %v410_v31  ;;  %1756 = vmatpush3.msk.msra.mxu1 %vm416_vm4, %v680_v30 }
 0x120   : > { %v846_v34 = vpop.permute.xlu0 %845  ;;  %1743 = vmatmul.mubr.msk.f32.vlgmr.msra.gmra.mrb[0].mxu0 %vm412_vm5, %v411_v29  ;;  %1750 = vmatprep.subr.mxu0 %v1994_v3  ;;  %v844_v35 = vpop.permute.xlu1 %843 }
 0x121   : > { %v848_v36 = vsel %vm847_vm11, %v844_v35, %v846_v34  ;;  %1751 = vmatpush3.msk.msra.mxu0 %vm416_vm4, %v590_v33  ;;  %1765 = vmatprep.subr.mxu1 %v1994_v3 }
 0x122   : > { %v850_v38 = vsel %vm2177_vm10, %v848_v36, 0.0  ;;  %1752 = vmatprep.mubr.msk.f32.mxu0 %vm1995_vm2, %v1994_v3  ;;  %1758 = vmatmul.mubr.msk.f32.vlgmr.msra.gmra.mrb[2].mxu1 %vm412_vm5, %v1687_v32 }
 0x123   : > { %1766 = vmatpush3.msk.msra.mxu1 %vm416_vm4, %v850_v38  ;;  %1760 = vmatprep.subr.mxu0 %v1994_v3 }
 0x124   : > { %v936_v41 = vpop.permute.xlu0 %935  ;;  %1753 = vmatmul.mubr.msk.f32.vlgmr.msra.gmra.mrb[2].mxu0 %vm412_vm5, %v1684_v37  ;;  %v934_v42 = vpop.permute.xlu1 %933  ;;  %1767 = vmatprep.mubr.msk.f32.mxu1 %vm1995_vm2, %v1994_v3 }
 0x125   : > { %v938_v43 = vsel %vm937_vm12, %v934_v42, %v936_v41  ;;  %1761 = vmatpush3.msk.msra.mxu0 %vm416_vm4, %v760_v39  ;;  %1762 = vmatprep.mubr.msk.f32.mxu0 %vm1995_vm2, %v1994_v3 }
 0x126   : > { %v940_v45 = vsel %vm2173_vm9, %v938_v43, 0.0  ;;  %1768 = vmatmul.mubr.msk.f32.vlgmr.msra.gmra.mrb[4].mxu1 %vm412_vm5, %v1693_v40  ;;  %1770 = vmatprep.subr.mxu0 %v1994_v3  ;;  %v1533_v43 = vstv %s1532_s18 }
 0x127   : > { %1775 = vmatprep.subr.mxu1 %v1994_v3  ;;  %1777 = vmatprep.mubr.msk.f32.mxu1 %vm1995_vm2, %v1994_v3 }
 0x128   : > { %v1028_v46 = vpop.permute.xlu0 %1027  ;;  %1763 = vmatmul.mubr.msk.f32.vlgmr.msra.gmra.mrb[4].mxu0 %vm412_vm5, %v1690_v44  ;;  %v1026_v47 = vpop.permute.xlu1 %1025 }
 0x129   : > { %1771 = vmatpush3.msk.msra.mxu0 %vm416_vm4, %v940_v45  ;;  %v1030_v49 = vsel %vm1029_vm13, %v1026_v47, %v1028_v46  ;;  %1772 = vmatprep.mubr.msk.f32.mxu0 %vm1995_vm2, %v1994_v3 }
 0x12a   : > { %1776 = vmatpush3.msk.msra.mxu1 %vm416_vm4, %v1030_v49  ;;  %1780 = vmatprep.subr.mxu0 %v1994_v3 }
 0x12b   : > { %1778 = vmatmul.mubr.msk.f32.vlgmr.msra.gmra.mrb[6].mxu1 %vm412_vm5, %v1699_v48  ;;  %1785 = vmatprep.subr.mxu1 %v1994_v3 }
 0x12c   : > { %v1113_v52 = vpop.permute.xlu0 %1112  ;;  %1773 = vmatmul.mubr.msk.f32.vlgmr.msra.gmra.mrb[6].mxu0 %vm412_vm5, %v1696_v50  ;;  %v1111_v53 = vpop.permute.xlu1 %1110  ;;  %1786 = vmatpush3.msra.mxu1 %v1198_v51 }
 0x12d   : > { %v1115_v54 = vsel %vm1114_vm14, %v1111_v53, %v1113_v52  ;;  %1787 = vmatprep.mubr.msk.f32.mxu1 %vm1995_vm2, %v1994_v3  ;;  %1782 = vmatprep.mubr.msk.f32.mxu0 %vm1995_vm2, %v1994_v3 }
 0x12e   : > { %v1117_v56 = vsel %vm2177_vm10, %v1115_v54, 0.0  ;;  %1795 = vmatprep.subr.mxu1 %v1994_v3 }
 0x12f   : > { %1781 = vmatpush3.msk.msra.mxu0 %vm416_vm4, %v1117_v56  ;;  %1788 = vmatmul.mubr.msk.f32.vlgmr.msra.gmra.mrb[8].mxu1 %vm1199_vm15, %v2155_v9  ;;  %vm1527_vm4 = vcmask 654336  }
 0x130   : > { %1783 = vmatmul.mubr.msk.f32.vlgmr.msra.gmra.mrb[8].mxu0 %vm412_vm5, %v1702_v55  ;;  %v1348_v57 = vpop.permute.xlu0 %1347  ;;  %1796 = vmatpush3.msra.mxu1 %v1198_v51  ;;  %v1274_v58 = vpop.permute.xlu1 %1273  ;;  %vm1529_vm5 = vcmask 785408  }
 0x131   : > { %1797 = vmatprep.mubr.msk.f32.mxu1 %vm1995_vm2, %v1994_v3  ;;  %1790 = vmatprep.subr.mxu0 %v1994_v3 }
 0x132   : > { %1791 = vmatpush3.msra.mxu0 %v1198_v51  ;;  %1792 = vmatprep.mubr.msk.f32.mxu0 %vm1995_vm2, %v1994_v3 }
 0x133   : > { %1798 = vmatmul.mubr.msk.f32.vlgmr.msra.gmra.mrb[10].mxu1 %vm1199_vm15, %v1348_v57  ;;  %1800 = vmatprep.subr.mxu0 %v1994_v3 }
 0x134   : > { %1793 = vmatmul.mubr.msk.f32.vlgmr.msra.gmra.mrb[10].mxu0 %vm1199_vm15, %v1274_v58  ;;  %v1422_v59 = vpop.permute.xlu1 %1421 }
 0x135   : > { %1801 = vmatpush3.msra.mxu0 %v1198_v51  ;;  %1802 = vmatprep.mubr.msk.f32.mxu0 %vm1995_vm2, %v1994_v3  ;;  %vm1525_vm2 = vcmask 523264  }
 0x138   : > { %1803 = vmatmul.mubr.msk.f32.vlgmr.msra.gmra.mrb[12].mxu0 %vm1199_vm15, %v1422_v59 }
 0x141   : > { %v396_v62 = vpop.permute.xlu0 %395 }
 0x1ea   : > { %v573_v60 = vpop.f32.mrb[0].mxu1 }
 0x1eb   : > { %v1749_v61 = vpop.f32.mrb[1].mxu1 }
 0x1f3   : > { %v486_v63 = vpop.f32.mrb[0].mxu0 }
 0x1f4   : > { %v490_v0 = vadd.f32 %v486_v63, %v396_v62  ;;  %v1744_v1 = vpop.f32.mrb[1].mxu0 }
 0x1f5   : > { %v755_v2 = vpop.f32.mrb[2].mxu1 }
 0x1f6   : > { %v577_v4 = vadd.f32 %v573_v60, %v490_v0  ;;  %v1759_v5 = vpop.f32.mrb[3].mxu1 }
 0x1f7   : > { %v665_v6 = vpop.f32.mrb[2].mxu0 }
 0x1f8   : > { %v669_v7 = vadd.f32 %v665_v6, %v577_v4  ;;  %v1754_v8 = vpop.f32.mrb[3].mxu0 }
 0x1f9   : > { %v925_v9 = vpop.f32.mrb[4].mxu1 }
 0x1fa   : > { %v759_v10 = vadd.f32 %v755_v2, %v669_v7  ;;  %v1769_v11 = vpop.f32.mrb[5].mxu1 }
 0x1fb   : > { %v835_v12 = vpop.f32.mrb[4].mxu0 }
 0x1fc   : > { %v839_v3 = vadd.f32 %v835_v12, %v759_v10  ;;  %v1764_v13 = vpop.f32.mrb[5].mxu0 }
 0x1fe   : > { %v929_v14 = vadd.f32 %v925_v9, %v839_v3  ;;  %v1102_v15 = vpop.f32.mrb[6].mxu1 }
 0x1ff   : > { %v1015_v16 = vpop.f32.mrb[6].mxu0  ;;  %v1779_v17 = vpop.f32.mrb[7].mxu1 }
 0x200   : > { %v1019_v18 = vadd.f32 %v1015_v16, %v929_v14  ;;  %v1774_v19 = vpop.f32.mrb[7].mxu0 }
 0x202   : > { %v1106_v20 = vadd.f32 %v1102_v15, %v1019_v18  ;;  %v1269_v21 = vpop.f32.mrb[8].mxu1 }
 0x203   : > { %1496 = vrot.lane.b32.xlu1 %v1269_v21, %s1996_s21  ;;  %v1192_v22 = vpop.f32.mrb[8].mxu0  ;;  %v1789_v23 = vpop.f32.mrb[9].mxu1  ;;  %s2010_s21 = smov 96  }
 0x204   : > { %v1196_v24 = vadd.f32 %v1192_v22, %v1106_v20  ;;  %v1784_v25 = vpop.f32.mrb[9].mxu0 }
 0x206   : > { %v1417_v26 = vpop.f32.mrb[10].mxu1 }
 0x207   : > { %1507 = vrot.lane.b32.xlu1 %v1417_v26, %s2006_s25  ;;  %1510 = vrot.lane.b32.xlu0 %v1417_v26, %s2007_s11  ;;  %v1799_v27 = vpop.f32.mrb[11].mxu1  ;;  %v1343_v28 = vpop.f32.mrb[10].mxu0  ;;  %s1553_s25 = sshll.u32 %s340_s0, 4  ;;  %s2284_s25 = int_to_ptr.vmem [resolvable:$true] %s1553_s25 }
 0x208   : > { %v1794_v29 = vpop.f32.mrb[11].mxu0 }
 0x20b   : > { %1500 = vrot.lane.b32.xlu1 %v1343_v28, %s2008_s14  ;;  %1503 = vrot.lane.b32.xlu0 %v1343_v28, %s2009_s17  ;;  %v1491_v30 = vpop.f32.mrb[12].mxu0  ;;  %s1897_s17 = scalar_lea.vmem %s2284_s25, 64 }
 0x20c   : > { %v1804_v31 = vpop.f32.mrb[13].mxu0  ;;  %p1898_p0 = scmp.ne.s32.totalorder %s2284_s25, %s1897_s17 }
 0x20e   : > { %p1899_p1 = pnand %p1898_p0, %p2106_p3 }
 0x20f   : > { %1514 = vrot.lane.b32.xlu1 %v1491_v30, %s2010_s21  ;;  %1517 = vrot.lane.b32.xlu0 %v1491_v30, %s1993_s13  ;;  %s1549_s13 = sadd.s32 %s1975_s29, %s1710_s23  ;;  %s1538_s29 = scalar_lea.sflag [#allocation5], %s338_s19 }
 0x210   : > { %s1711_s24 = sshll.u32 %s1549_s13, 6  ;;  %p1900_p2 = pneg %p1899_p1 }
 0x211   : > { %s2282_s14 = scalar_lea.hbm %s2342_s7, %s1711_s24  ;;  %s2011_s21 = smov [#allocation4]  }
 0x212   : > { %s1901_s18 = sshll.u32 %s2011_s21, 4  ;;  %s1902_s18 = int_to_ptr.vmem [resolvable:$false] %s1901_s18 }
 0x213   : > { %s1903_s22 = scalar_lea.vmem %s1902_s18, 128  ;;  %p1904_p4 = scmp.lt.s32.totalorder %s2284_s25, %s1902_s18 }
 0x214   : > { %p1905_p5 = scmp.lt.s32.totalorder %s1903_s22, %s1897_s17 }
 0x216   : > { %p1906_p6 = por %p1905_p5, %p1904_p4 }
 0x218   : > { %p1907_p7 = pnand %p1906_p6, %p1900_p2 }
 0x275   : > { %v1497_v32 = vpop.permute.xlu1 %1496 }
 0x276   : > { %v1520_v35 = vsel %vm500_vm3, %v1269_v21, %v1497_v32 }
 0x279   : > { %v1508_v33 = vpop.permute.xlu1 %1507  ;;  %v1511_v34 = vpop.permute.xlu0 %1510 }
 0x27d   : > { %v1501_v36 = vpop.permute.xlu1 %1500  ;;  %v1504_v37 = vpop.permute.xlu0 %1503 }
 0x27e   : > { %v1522_v38 = vsel %vm1521_vm0, %v1520_v35, %v1501_v36 }
 0x27f   : > { %v1524_v39 = vsel %vm1523_vm1, %v1522_v38, %v1504_v37 }
 0x280   : > { %v1526_v40 = vsel %vm1525_vm2, %v1524_v39, %v1508_v33 }
 0x281   : > { %v1528_v41 = vsel %vm1527_vm4, %v1526_v40, %v1511_v34  ;;  %v1515_v42 = vpop.permute.xlu1 %1514  ;;  %v1518_v44 = vpop.permute.xlu0 %1517 }
 0x282   : > { %v1530_v45 = vsel %vm1529_vm5, %v1528_v41, %v1515_v42 }
 0x283   : > { %v1531_v46 = vsel %vm1029_vm13, %v1530_v45, %v1518_v44 }
 0x284   : > { %v1534_v47 = vmul.f32 %v1533_v43, %v1531_v46 }
 0x286   : > { %v1535_v48 = vadd.f32 %v1534_v47, %v1196_v24 }
 0x288   : > { %1536 = vst [vmem:[%s340_s0] sm:$0xf] %v1535_v48 }
 0x289   : > { %1910 = shalt.err (!%p1907_p7)
}
 0x28a   : > { %s1911_s19 = scalar_lea.hbm %s2282_s14, 64  ;;  %s1915_s24 = scalar_lea.hbm %s2342_s7, 256 }
 0x28b   : > { %p1912_p9 = scmp.ne.s32.totalorder %s2282_s14, %s1911_s19  ;;  %p1916_p12 = scmp.lt.u32.totalorder %s2282_s14, %s2342_s7 }
 0x28c   : > { %p1917_p13 = scmp.lt.u32.totalorder %s1915_s24, %s1911_s19  ;;  %p1919_p1 = scmp.lt.u32.totalorder %s1911_s19, %s2282_s14 }
 0x28d   : > { %p1913_p10 = pnand %p1912_p9, %p2106_p3 }
 0x28e   : > { %p1918_p0 = por %p1917_p13, %p1916_p12 }
 0x28f   : > { %p1914_p11 = pneg %p1913_p10 }
 0x290   : > { %p1920_p2 = por %p1919_p1, %p1918_p0 }
 0x292   : > { %p1921_p4 = pnand %p1920_p2, %p1914_p11 }
 0x294   : > { %1924 = shalt.err (!%p1921_p4)
}
 0x295   : > { %1805 = dma.vmem_to_hbm [thread:$0]  (%p2106_p3), %s2284_s25, 64, %s2282_s14, %s1538_s29  }
 0x296 PF: > { %p1811_p5 = scmp.ge.s32.totalorder %s1991_s10, 2  ;;  %s1565_s11 = sand.u32 1, %s1963_s26  }
 0x297   : > { %s1566_s17 = scalar_lea.sflag [#allocation5], %s1565_s11 }
 0x298   : > { %p1808_p6 = pnand %p1811_p5, %p2115_p8 }
 0x29a   : > { %1958 = dma.done.wait (!%p1808_p6), %s1566_s17, 64  }
 0x29b   : > { %1960 = vsyncadd (!%p1808_p6), %s1566_s17, 4294967232  ;;  %s21_s10 = sadd.s32 1, %s1991_s10   ;;  %s2351_s15 = sld [smem:[#allocation7_spill]] }
 0x29c   : > { %p18_p7 = scmp.ge.s32.totalorder %s21_s10, 6   ;;  %s2352_s26 = smov %s1967_s27 }
 0x29d   : > { %s2353_s27 = smov %s1971_s28  ;;  %s2354_s28 = smov %s2124_s20 }
 0x29e   : > { %s2355_s29 = smov %s1983_s8  ;;  %s2356_s30 = smov %s1987_s9 }
 0x29f   : > { %s2357_s8 = smov %s2360_s12  ;;  %20 = sbr.rel (!%p18_p7) target bundleno = 7 (0x7), region = 97 }
 0x2a1   : > { %s2358_s9 = smov %s2351_s15 }
 0x2a6   :  { %1571 = vsyncpa [#allocation5], 1 }
 0x2a7   :  { %1573 = vsyncpa [#allocation5 + $0x1], 1 }

</bundles_post_ra>
